<compile_context>
chip_gen: v7x
topology: tpu7x:2x2x1
jax: 0.10.0
libtpu: 0.0.40
codegen_flags: <defaults>
</compile_context>

<pallas_src>
import functools

import jax
import jax.numpy as jnp
from jax.experimental import pallas as pl
from jax.experimental.pallas import tpu as pltpu


def _round_up(v, m):
    return (v + m - 1) // m * m


def _vmem_tile_bytes(rows, cols, itemsize):
    """VMEM footprint of a 2-D tile after (sublane, 128-lane) padding."""
    sub = {1: 32, 2: 16, 4: 8}[itemsize]
    return _round_up(max(rows, 1), sub) * _round_up(max(cols, 1), 128) * itemsize


def _vmem_capacity_bytes():
    try:
        return int(pltpu.get_tpu_info().vmem_capacity_bytes)
    except Exception:
        return 64 * 2**20          # conservative (v7x per-TC VMEM)


def _default_tile_sizes():
    # v5e/v6e (128 MiB VMEM): deeper reduction tiles; v7x (64 MiB): tm=1024.
    return (512, 2048) if _vmem_capacity_bytes() >= 100 * 2**20 else (512, 1024)


def _choose_tiles(N, M, tn, tm):
    d_tn, d_tm = _default_tile_sizes()
    tn = d_tn if tn is None else tn
    tm = d_tm if tm is None else tm
    tn = max(32, min(_round_up(tn, 32), _round_up(N, 32)))     # int8 adj: 32-sublane
    tm = max(128, min(_round_up(tm, 128), _round_up(M, 128)))
    # Megacore (v7x): make sure the "parallel" row axis has >= 2 grid points so
    # both TensorCores get work.  No effect on single-TC v5e/v6e.
    if _round_up(N, tn) // tn < 2 and N > 32:
        tn = _round_up(-(-N // 2), 32)
    return tn, tm, _round_up(N, tn), _round_up(M, tm)


def prepare_adjacency(adj_mask, *, tn=None, tm=None):
    """Pad + tile the (static) adjacency and build the per-tile nnz table.

    adj is a fixed buffer in SpGAT, so callers should run this once and reuse
    the result across forward calls (it streams the full adjacency)."""
    N, M = adj_mask.shape
    tn, tm, n_pad, m_pad = _choose_tiles(N, M, tn, tm)
    gn, gm = n_pad // tn, m_pad // tm
    adj_i8 = (adj_mask != 0).astype(jnp.int8)
    adj_p = jnp.zeros((n_pad, m_pad), jnp.int8).at[:N, :M].set(adj_i8)
    nnz = (adj_p.astype(jnp.int32)
           .reshape(gn, tn, gm, tm).sum(axis=(1, 3)).reshape(-1))
    return dict(adj_p=adj_p, nnz=nnz, tn=tn, tm=tm,
                n_pad=n_pad, m_pad=m_pad, N=N, M=M)


def _spgat_tile_kernel(nnz_ref, s1_ref, s2_ref, hy_ref, adj_ref, o_ref,
                       num_acc, *, alpha, nheads, f_out, tm, hy_resident,
                       compute_dtype):
    i = pl.program_id(0)
    m = pl.program_id(1)
    n_m = pl.num_programs(1)
    fo1 = f_out + 1

    @pl.when(m == 0)
    def _init():
        num_acc[...] = jnp.zeros_like(num_acc)

    # Skip compute for adjacency tiles with zero edges (includes padding tiles).
    @pl.when(nnz_ref[i * n_m + m] > 0)
    def _compute():
        # single float adjacency tile, shared by all heads
        adjf = adj_ref[...].astype(jnp.float32).astype(compute_dtype)   # (TN, TM)
        s1 = s1_ref[...]                                                # (TN, H)
        s2 = s2_ref[...]                                                # (H, TM)
        if hy_resident:
            off = pl.multiple_of(m * tm, 128)
            hy = hy_ref[pl.ds(off, tm), :]        # slice VMEM-resident hy
        else:
            hy = hy_ref[...]                      # streamed (TM, H*(f_out+1)) block
        partials = []
        for h in range(nheads):                   # static unroll (small H)
            score = s1[:, h:h + 1] + s2[h:h + 1, :]        # (TN, TM)
            lrelu = jnp.maximum(score, alpha * score)      # LeakyReLU, no select
            e = jnp.exp(-lrelu) * adjf                     # masked edge_e
            # ones column folded into hy -> last output lane is the row-sum
            partials.append(jnp.dot(e, hy[:, h * fo1:(h + 1) * fo1],
                                    preferred_element_type=jnp.float32))
        num_acc[...] += jnp.concatenate(partials, axis=1)  # one wide scratch RMW

    @pl.when(m == n_m - 1)
    def _finalize():
        # Runs once per row-tile (gn times total) -> off the critical path.
        num = num_acc[...]
        outs = []
        for h in range(nheads):
            base = h * fo1
            rs = num[:, base + f_out:base + fo1]           # (TN, 1) e_rowsum
            inv = jnp.where(rs > 0.0, pl.reciprocal(rs, approx=True), 0.0)
            outs.append(num[:, base:base + f_out] * inv)
        o_ref[...] = jnp.concatenate(outs, axis=1).astype(o_ref.dtype)


def spgat_forward(x, y, adj_mask, W, a, nheads, alpha, *,
                  tn=None, tm=None, compute_dtype=jnp.float32,
                  hy_resident=None, prepared=None):
    """SpGAT.forward (eval mode): heads share W/a; output is per-head concat.

    compute_dtype: float32 everywhere (recommended on v5e) or bfloat16 for the
    score/exp chain and MXU operands with f32 accumulation (v6e/v7x)."""
    N, nfeat = x.shape
    M = y.shape[0]
    assert nfeat % nheads == 0
    f_in = nfeat // nheads
    f_out = W.shape[1]
    fo1 = f_out + 1
    H = nheads
    hp = jax.lax.Precision.HIGHEST
    use_bf16 = jnp.dtype(compute_dtype) == jnp.dtype(jnp.bfloat16)

    if prepared is None:
        prepared = prepare_adjacency(adj_mask, tn=tn, tm=tm)
    assert prepared["N"] == N and prepared["M"] == M
    tn, tm = prepared["tn"], prepared["tm"]
    n_pad, m_pad = prepared["n_pad"], prepared["m_pad"]
    gn, gm = n_pad // tn, m_pad // tm

    # ---- hoisted projections (tiny O(N*nfeat) XLA matmuls, done once) ----
    a1 = a[0, :f_out]
    a2 = a[0, f_out:]
    x_h = x.reshape(N, H, f_in)          # head h == torch.chunk(x, H, 1)[h]
    y_h = y.reshape(M, H, f_in)
    hy = jnp.einsum('mhf,fo->mho', y_h, W, precision=hp)             # (M, H, f_out)
    s1 = jnp.einsum('nhf,f->nh', x_h, jnp.dot(W, a1, precision=hp),
                    precision=hp)                                    # (N, H)
    s2 = jnp.einsum('mhf,f->mh', y_h, jnp.dot(W, a2, precision=hp),
                    precision=hp)                                    # (M, H)

    # ones column folded in so the attention matmul also yields e_rowsum
    hy_dtype = jnp.bfloat16 if use_bf16 else jnp.float32
    hy1 = jnp.concatenate([hy, jnp.ones((M, H, 1), hy.dtype)], axis=-1)
    hy1 = hy1.reshape(M, H * fo1).astype(hy_dtype)
    hy_p = jnp.zeros((m_pad, H * fo1), hy_dtype).at[:M].set(hy1)
    s1_p = jnp.zeros((n_pad, H), compute_dtype).at[:N].set(s1.astype(compute_dtype))
    s2_p = jnp.zeros((H, m_pad), compute_dtype).at[:, :M].set(
        s2.T.astype(compute_dtype))

    # ---- hy residency: keep the whole (padded) hy in VMEM when it fits ----
    vmem_cap = _vmem_capacity_bytes()
    hy_budget = 40 * 2**20 if vmem_cap >= 100 * 2**20 else 16 * 2**20
    hy_itm = jnp.dtype(hy_dtype).itemsize
    resident_bytes = 2 * _vmem_tile_bytes(m_pad, H * fo1, hy_itm)
    if hy_resident is None:
        hy_resident = resident_bytes <= hy_budget
    if hy_resident:
        hy_spec = pl.BlockSpec((m_pad, H * fo1), lambda i, m, nnz: (0, 0))
        hy_bytes = resident_bytes
    else:
        hy_spec = pl.BlockSpec((tm, H * fo1), lambda i, m, nnz: (m, 0))
        hy_bytes = 2 * _vmem_tile_bytes(tm, H * fo1, hy_itm)

    # ---- VMEM budget from the actual (lane/sublane-padded) tile footprint ----
    c_itm = jnp.dtype(compute_dtype).itemsize
    o_itm = jnp.dtype(x.dtype).itemsize
    fixed = (2 * _vmem_tile_bytes(tn, H, c_itm)             # s1 (double buffered)
             + 2 * _vmem_tile_bytes(H, tm, c_itm)           # s2
             + 2 * _vmem_tile_bytes(tn, tm, 1)              # adj (int8)
             + 2 * _vmem_tile_bytes(tn, H * f_out, o_itm)   # output tile
             + _vmem_tile_bytes(tn, H * fo1, 4))            # accumulator scratch
    vmem_limit = int(min(60 * 2**20,
                         max(16 * 2**20, fixed + hy_bytes + 4 * 2**20)))

    kernel = functools.partial(
        _spgat_tile_kernel, alpha=alpha, nheads=H, f_out=f_out, tm=tm,
        hy_resident=hy_resident, compute_dtype=compute_dtype)

    out_p = pl.pallas_call(
        kernel,
        out_shape=jax.ShapeDtypeStruct((n_pad, H * f_out), x.dtype),
        grid_spec=pltpu.PrefetchScalarGridSpec(
            num_scalar_prefetch=1,
            grid=(gn, gm),
            in_specs=[
                pl.BlockSpec((tn, H), lambda i, m, nnz: (i, 0)),    # s1
                pl.BlockSpec((H, tm), lambda i, m, nnz: (0, m)),    # s2
                hy_spec,                                            # hy (+ ones col)
                pl.BlockSpec((tn, tm), lambda i, m, nnz: (i, m)),   # adj int8
            ],
            out_specs=pl.BlockSpec((tn, H * f_out), lambda i, m, nnz: (i, 0)),
            scratch_shapes=[
                pltpu.VMEM((tn, H * fo1), jnp.float32),   # [numerator | rowsum] acc
            ],
        ),
        compiler_params=pltpu.CompilerParams(
            dimension_semantics=("parallel", "arbitrary"),
            vmem_limit_bytes=vmem_limit),
    )(prepared["nnz"], s1_p, s2_p, hy_p, prepared["adj_p"])

    return out_p[:N]


def spgat_reference(x, y, adj_mask, W, a, nheads, alpha):
    """Pure-JAX reference mirroring the PyTorch forward (eval mode)."""
    N, nfeat = x.shape
    f_in = nfeat // nheads
    f_out = W.shape[1]
    hp = jax.lax.Precision.HIGHEST
    a1, a2 = a[:, :f_out], a[:, f_out:]
    adj = (adj_mask != 0).astype(jnp.float32)
    outs = []
    for i in range(nheads):
        xh = x[:, i * f_in:(i + 1) * f_in]
        yh = y[:, i * f_in:(i + 1) * f_in]
        h = jnp.dot(xh, W, precision=hp)
        hy = jnp.dot(yh, W, precision=hp)
        score = jnp.dot(h, a1.T, precision=hp) + jnp.dot(hy, a2.T, precision=hp).T
        lrelu = jnp.where(score > 0, score, alpha * score)
        e = jnp.exp(-lrelu) * adj
        rowsum = e.sum(axis=1, keepdims=True)
        num = jnp.dot(e, hy, precision=hp)
        outs.append(jnp.where(rowsum > 0, num / rowsum, 0.0))
    return jnp.concatenate(outs, axis=1)


if __name__ == "__main__":
    key = jax.random.PRNGKey(0)
    N, M = 176, 272
    nfeat, nhid, nheads = 32, 32, 4
    alpha = 0.2
    f_in, f_out = nfeat // nheads, nhid // nheads

    k1, k2, k3, k4, k5 = jax.random.split(key, 5)
    x = jax.random.normal(k1, (N, nfeat), jnp.float32)
    y = jax.random.normal(k2, (M, nfeat), jnp.float32)
    # sparse adjacency; carve an all-zero block so the scalar-prefetched
    # tile-skip path is actually exercised
    adj = jax.random.bernoulli(k3, 0.08, (N, M))
    adj = adj & ~((jnp.arange(N)[:, None] < 64) & (jnp.arange(M)[None, :] >= 128))
    adj_i8 = adj.astype(jnp.int8)
    # parameters: truncated_normal(std=0.02), shapes from SpGraphAttentionLayer
    W = 0.02 * jax.random.truncated_normal(k4, -2.0, 2.0, (f_in, f_out), jnp.float32)
    a = 0.02 * jax.random.truncated_normal(k5, -2.0, 2.0, (1, 2 * f_out), jnp.float32)

    ref = spgat_reference(x, y, adj_i8, W, a, nheads, alpha)

    # (1) small tiles: multi-tile accumulation, padding, tile skipping; cached adj
    prep = prepare_adjacency(adj_i8, tn=64, tm=128)
    out = jax.block_until_ready(
        spgat_forward(x, y, adj_i8, W, a, nheads, alpha, prepared=prep))
    assert out.shape == (N, nhid)
    assert jnp.allclose(out, ref, atol=1e-3, rtol=1e-2), \
        float(jnp.max(jnp.abs(out - ref)))

    # (2) default (large) tiles: VMEM-resident hy + >=2 row tiles for megacore
    out_big = jax.block_until_ready(
        spgat_forward(x, y, adj_i8, W, a, nheads, alpha))
    assert jnp.allclose(out_big, ref, atol=1e-3, rtol=1e-2)

    # (3) streamed-hy fallback path (used when hy does not fit the VMEM budget)
    out_stream = jax.block_until_ready(
        spgat_forward(x, y, adj_i8, W, a, nheads, alpha, prepared=prep,
                      hy_resident=False))
    assert jnp.allclose(out_stream, ref, atol=1e-3, rtol=1e-2)

    # (4) bf16 score/exp chain + bf16 MXU operands, f32 accumulation (v6e/v7x)
    out_bf16 = jax.block_until_ready(
        spgat_forward(x, y, adj_i8, W, a, nheads, alpha, prepared=prep,
                      compute_dtype=jnp.bfloat16))
    assert jnp.allclose(out_bf16, ref, atol=5e-2, rtol=5e-2)

    print("KERNEL_OK")
</pallas_src>

<mosaic_0001>
module attributes {stable_mosaic.version = 11 : i64} {
  func.func @_spgat_tile_kernel(%arg0: i32, %arg1: i32, %arg2: memref<9xi32, #tpu.memory_space<smem>>, %arg3: memref<64x4xf32, #tpu.memory_space<vmem>>, %arg4: memref<4x128xf32, #tpu.memory_space<vmem>>, %arg5: memref<384x36xf32, #tpu.memory_space<vmem>>, %arg6: memref<64x128xi8, #tpu.memory_space<vmem>>, %arg7: memref<64x32xf32, #tpu.memory_space<vmem>>, %arg8: memref<64x36xf32, #tpu.memory_space<vmem>>) attributes {dimension_semantics = [#tpu.dimension_semantics<parallel>, #tpu.dimension_semantics<arbitrary>], iteration_bounds = array<i64: 3, 3>, scalar_prefetch = 1 : i64, scratch_operands = 1 : i64, tpu.core_type = #tpu.core_type<tc>, window_params = [{transform_indices = @transform_0, window_bounds = array<i64: 64, 4>}, {transform_indices = @transform_1, window_bounds = array<i64: 4, 128>}, {pipeline_mode = #tpu.pipeline_mode<synchronous>, transform_indices = @transform_2, window_bounds = array<i64: 384, 36>}, {transform_indices = @transform_3, window_bounds = array<i64: 64, 128>}, {transform_indices = @transform_4, window_bounds = array<i64: 64, 32>}]} {
    %c0_i32 = arith.constant 0 : i32
    %0 = arith.cmpi eq, %arg1, %c0_i32 : i32
    %1 = arith.extui %0 : i1 to i32
    %c0_i32_0 = arith.constant 0 : i32
    %2 = arith.cmpi ne, %1, %c0_i32_0 : i32
    scf.if %2 {
      %cst = arith.constant 0.000000e+00 : f32
      %13 = vector.broadcast %cst : f32 to vector<64x36xf32>
      %c0 = arith.constant 0 : index
      %c0_4 = arith.constant 0 : index
      %14 = vector.load %arg8[%c0, %c0_4] : memref<64x36xf32, #tpu.memory_space<vmem>>, vector<64x36xf32>
      tpu.vector_store %arg8[%c0, %c0_4], %13 {strides = array<i32>} : memref<64x36xf32, #tpu.memory_space<vmem>>, vector<64x36xf32>,
    } else {
    }
    %c3_i32 = arith.constant 3 : i32
    %3 = arith.muli %arg0, %c3_i32 : i32
    %4 = arith.addi %3, %arg1 : i32
    %5 = arith.index_cast %4 : i32 to index
    %6 = memref.load %arg2[%5] : memref<9xi32, #tpu.memory_space<smem>>
    %c0_i32_1 = arith.constant 0 : i32
    %7 = arith.cmpi sgt, %6, %c0_i32_1 : i32
    %8 = arith.extui %7 : i1 to i32
    %c0_i32_2 = arith.constant 0 : i32
    %9 = arith.cmpi ne, %8, %c0_i32_2 : i32
    scf.if %9 {
      %c0 = arith.constant 0 : index
      %c0_4 = arith.constant 0 : index
      %13 = vector.load %arg6[%c0, %c0_4] : memref<64x128xi8, #tpu.memory_space<vmem>>, vector<64x128xi8>
      %14 = arith.sitofp %13 : vector<64x128xi8> to vector<64x128xf32>
      %c0_5 = arith.constant 0 : index
      %c0_6 = arith.constant 0 : index
      %15 = vector.load %arg3[%c0_5, %c0_6] : memref<64x4xf32, #tpu.memory_space<vmem>>, vector<64x4xf32>
      %c0_7 = arith.constant 0 : index
      %c0_8 = arith.constant 0 : index
      %16 = vector.load %arg4[%c0_7, %c0_8] : memref<4x128xf32, #tpu.memory_space<vmem>>, vector<4x128xf32>
      %c128_i32 = arith.constant 128 : i32
      %17 = arith.muli %arg1, %c128_i32 : i32
      %18 = tpu.assume_multiple %17, 128 : i32
      %19 = arith.index_cast %18 : i32 to index
      %c0_9 = arith.constant 0 : index
      %20 = vector.load %arg5[%19, %c0_9] : memref<384x36xf32, #tpu.memory_space<vmem>>, vector<128x36xf32>
      %21 = vector.extract_strided_slice %15 {offsets = [0, 0], sizes = [64, 1], strides = [1, 1]} : vector<64x4xf32> to vector<64x1xf32>
      %22 = vector.extract_strided_slice %16 {offsets = [0, 0], sizes = [1, 128], strides = [1, 1]} : vector<4x128xf32> to vector<1x128xf32>
      %23 = vector.broadcast %21 : vector<64x1xf32> to vector<64x128xf32>
      %24 = vector.broadcast %22 : vector<1x128xf32> to vector<64x128xf32>
      %25 = arith.addf %23, %24 : vector<64x128xf32>
      %cst = arith.constant 2.000000e-01 : f32
      %26 = vector.broadcast %cst : f32 to vector<64x128xf32>
      %27 = arith.mulf %26, %25 : vector<64x128xf32>
      %28 = arith.maximumf %25, %27 : vector<64x128xf32>
      %cst_10 = arith.constant 0.000000e+00 : f32
      %29 = vector.broadcast %cst_10 : f32 to vector<64x128xf32>
      %30 = arith.subf %29, %28 : vector<64x128xf32>
      %31 = math.exp %30 : vector<64x128xf32>
      %32 = arith.mulf %31, %14 : vector<64x128xf32>
      %33 = vector.extract_strided_slice %20 {offsets = [0, 0], sizes = [128, 9], strides = [1, 1]} : vector<128x36xf32> to vector<128x9xf32>
      %cst_11 = arith.constant dense<0.000000e+00> : vector<64x9xf32>
      %34 = tpu.matmul %32, %33, %cst_11 {dimension_numbers = #tpu.dot_dimension_numbers<[1], [0], [0], [1], [0, 0, 1, 1], [], []>} : vector<64x128xf32>, vector<128x9xf32>, vector<64x9xf32> -> vector<64x9xf32>
      %35 = vector.extract_strided_slice %15 {offsets = [0, 1], sizes = [64, 1], strides = [1, 1]} : vector<64x4xf32> to vector<64x1xf32>
      %36 = vector.extract_strided_slice %16 {offsets = [1, 0], sizes = [1, 128], strides = [1, 1]} : vector<4x128xf32> to vector<1x128xf32>
      %37 = vector.broadcast %35 : vector<64x1xf32> to vector<64x128xf32>
      %38 = vector.broadcast %36 : vector<1x128xf32> to vector<64x128xf32>
      %39 = arith.addf %37, %38 : vector<64x128xf32>
      %cst_12 = arith.constant 2.000000e-01 : f32
      %40 = vector.broadcast %cst_12 : f32 to vector<64x128xf32>
      %41 = arith.mulf %40, %39 : vector<64x128xf32>
      %42 = arith.maximumf %39, %41 : vector<64x128xf32>
      %cst_13 = arith.constant 0.000000e+00 : f32
      %43 = vector.broadcast %cst_13 : f32 to vector<64x128xf32>
      %44 = arith.subf %43, %42 : vector<64x128xf32>
      %45 = math.exp %44 : vector<64x128xf32>
      %46 = arith.mulf %45, %14 : vector<64x128xf32>
      %47 = vector.extract_strided_slice %20 {offsets = [0, 9], sizes = [128, 9], strides = [1, 1]} : vector<128x36xf32> to vector<128x9xf32>
      %cst_14 = arith.constant dense<0.000000e+00> : vector<64x9xf32>
      %48 = tpu.matmul %46, %47, %cst_14 {dimension_numbers = #tpu.dot_dimension_numbers<[1], [0], [0], [1], [0, 0, 1, 1], [], []>} : vector<64x128xf32>, vector<128x9xf32>, vector<64x9xf32> -> vector<64x9xf32>
      %49 = vector.extract_strided_slice %15 {offsets = [0, 2], sizes = [64, 1], strides = [1, 1]} : vector<64x4xf32> to vector<64x1xf32>
      %50 = vector.extract_strided_slice %16 {offsets = [2, 0], sizes = [1, 128], strides = [1, 1]} : vector<4x128xf32> to vector<1x128xf32>
      %51 = vector.broadcast %49 : vector<64x1xf32> to vector<64x128xf32>
      %52 = vector.broadcast %50 : vector<1x128xf32> to vector<64x128xf32>
      %53 = arith.addf %51, %52 : vector<64x128xf32>
      %cst_15 = arith.constant 2.000000e-01 : f32
      %54 = vector.broadcast %cst_15 : f32 to vector<64x128xf32>
      %55 = arith.mulf %54, %53 : vector<64x128xf32>
      %56 = arith.maximumf %53, %55 : vector<64x128xf32>
      %cst_16 = arith.constant 0.000000e+00 : f32
      %57 = vector.broadcast %cst_16 : f32 to vector<64x128xf32>
      %58 = arith.subf %57, %56 : vector<64x128xf32>
      %59 = math.exp %58 : vector<64x128xf32>
      %60 = arith.mulf %59, %14 : vector<64x128xf32>
      %61 = vector.extract_strided_slice %20 {offsets = [0, 18], sizes = [128, 9], strides = [1, 1]} : vector<128x36xf32> to vector<128x9xf32>
      %cst_17 = arith.constant dense<0.000000e+00> : vector<64x9xf32>
      %62 = tpu.matmul %60, %61, %cst_17 {dimension_numbers = #tpu.dot_dimension_numbers<[1], [0], [0], [1], [0, 0, 1, 1], [], []>} : vector<64x128xf32>, vector<128x9xf32>, vector<64x9xf32> -> vector<64x9xf32>
      %63 = vector.extract_strided_slice %15 {offsets = [0, 3], sizes = [64, 1], strides = [1, 1]} : vector<64x4xf32> to vector<64x1xf32>
      %64 = vector.extract_strided_slice %16 {offsets = [3, 0], sizes = [1, 128], strides = [1, 1]} : vector<4x128xf32> to vector<1x128xf32>
      %65 = vector.broadcast %63 : vector<64x1xf32> to vector<64x128xf32>
      %66 = vector.broadcast %64 : vector<1x128xf32> to vector<64x128xf32>
      %67 = arith.addf %65, %66 : vector<64x128xf32>
      %cst_18 = arith.constant 2.000000e-01 : f32
      %68 = vector.broadcast %cst_18 : f32 to vector<64x128xf32>
      %69 = arith.mulf %68, %67 : vector<64x128xf32>
      %70 = arith.maximumf %67, %69 : vector<64x128xf32>
      %cst_19 = arith.constant 0.000000e+00 : f32
      %71 = vector.broadcast %cst_19 : f32 to vector<64x128xf32>
      %72 = arith.subf %71, %70 : vector<64x128xf32>
      %73 = math.exp %72 : vector<64x128xf32>
      %74 = arith.mulf %73, %14 : vector<64x128xf32>
      %75 = vector.extract_strided_slice %20 {offsets = [0, 27], sizes = [128, 9], strides = [1, 1]} : vector<128x36xf32> to vector<128x9xf32>
      %cst_20 = arith.constant dense<0.000000e+00> : vector<64x9xf32>
      %76 = tpu.matmul %74, %75, %cst_20 {dimension_numbers = #tpu.dot_dimension_numbers<[1], [0], [0], [1], [0, 0, 1, 1], [], []>} : vector<64x128xf32>, vector<128x9xf32>, vector<64x9xf32> -> vector<64x9xf32>
      %c0_21 = arith.constant 0 : index
      %c0_22 = arith.constant 0 : index
      %77 = vector.load %arg8[%c0_21, %c0_22] : memref<64x36xf32, #tpu.memory_space<vmem>>, vector<64x36xf32>
      %78 = tpu.concatenate %34, %48, %62, %76 in 1 : vector<64x9xf32>, vector<64x9xf32>, vector<64x9xf32>, vector<64x9xf32> -> vector<64x36xf32>
      %79 = arith.addf %77, %78 : vector<64x36xf32>
      %c0_23 = arith.constant 0 : index
      %c0_24 = arith.constant 0 : index
      %80 = vector.load %arg8[%c0_23, %c0_24] : memref<64x36xf32, #tpu.memory_space<vmem>>, vector<64x36xf32>
      tpu.vector_store %arg8[%c0_23, %c0_24], %79 {strides = array<i32>} : memref<64x36xf32, #tpu.memory_space<vmem>>, vector<64x36xf32>,
    } else {
    }
    %c2_i32 = arith.constant 2 : i32
    %10 = arith.cmpi eq, %arg1, %c2_i32 : i32
    %11 = arith.extui %10 : i1 to i32
    %c0_i32_3 = arith.constant 0 : i32
    %12 = arith.cmpi ne, %11, %c0_i32_3 : i32
    scf.if %12 {
      %c0 = arith.constant 0 : index
      %c0_4 = arith.constant 0 : index
      %13 = vector.load %arg8[%c0, %c0_4] : memref<64x36xf32, #tpu.memory_space<vmem>>, vector<64x36xf32>
      %14 = vector.extract_strided_slice %13 {offsets = [0, 8], sizes = [64, 1], strides = [1, 1]} : vector<64x36xf32> to vector<64x1xf32>
      %cst = arith.constant 0.000000e+00 : f32
      %15 = vector.broadcast %cst : f32 to vector<64x1xf32>
      %16 = arith.cmpf ogt, %14, %15 : vector<64x1xf32>
      %17 = tpu.reciprocal %14 {approx = true} : vector<64x1xf32> -> vector<64x1xf32>
      %cst_5 = arith.constant 0.000000e+00 : f32
      %18 = vector.broadcast %cst_5 : f32 to vector<64x1xf32>
      %19 = arith.select %16, %17, %18 : vector<64x1xi1>, vector<64x1xf32>
      %20 = vector.extract_strided_slice %13 {offsets = [0, 0], sizes = [64, 8], strides = [1, 1]} : vector<64x36xf32> to vector<64x8xf32>
      %21 = vector.broadcast %19 : vector<64x1xf32> to vector<64x8xf32>
      %22 = arith.mulf %20, %21 : vector<64x8xf32>
      %23 = vector.extract_strided_slice %13 {offsets = [0, 17], sizes = [64, 1], strides = [1, 1]} : vector<64x36xf32> to vector<64x1xf32>
      %cst_6 = arith.constant 0.000000e+00 : f32
      %24 = vector.broadcast %cst_6 : f32 to vector<64x1xf32>
      %25 = arith.cmpf ogt, %23, %24 : vector<64x1xf32>
      %26 = tpu.reciprocal %23 {approx = true} : vector<64x1xf32> -> vector<64x1xf32>
      %cst_7 = arith.constant 0.000000e+00 : f32
      %27 = vector.broadcast %cst_7 : f32 to vector<64x1xf32>
      %28 = arith.select %25, %26, %27 : vector<64x1xi1>, vector<64x1xf32>
      %29 = vector.extract_strided_slice %13 {offsets = [0, 9], sizes = [64, 8], strides = [1, 1]} : vector<64x36xf32> to vector<64x8xf32>
      %30 = vector.broadcast %28 : vector<64x1xf32> to vector<64x8xf32>
      %31 = arith.mulf %29, %30 : vector<64x8xf32>
      %32 = vector.extract_strided_slice %13 {offsets = [0, 26], sizes = [64, 1], strides = [1, 1]} : vector<64x36xf32> to vector<64x1xf32>
      %cst_8 = arith.constant 0.000000e+00 : f32
      %33 = vector.broadcast %cst_8 : f32 to vector<64x1xf32>
      %34 = arith.cmpf ogt, %32, %33 : vector<64x1xf32>
      %35 = tpu.reciprocal %32 {approx = true} : vector<64x1xf32> -> vector<64x1xf32>
      %cst_9 = arith.constant 0.000000e+00 : f32
      %36 = vector.broadcast %cst_9 : f32 to vector<64x1xf32>
      %37 = arith.select %34, %35, %36 : vector<64x1xi1>, vector<64x1xf32>
      %38 = vector.extract_strided_slice %13 {offsets = [0, 18], sizes = [64, 8], strides = [1, 1]} : vector<64x36xf32> to vector<64x8xf32>
      %39 = vector.broadcast %37 : vector<64x1xf32> to vector<64x8xf32>
      %40 = arith.mulf %38, %39 : vector<64x8xf32>
      %41 = vector.extract_strided_slice %13 {offsets = [0, 35], sizes = [64, 1], strides = [1, 1]} : vector<64x36xf32> to vector<64x1xf32>
      %cst_10 = arith.constant 0.000000e+00 : f32
      %42 = vector.broadcast %cst_10 : f32 to vector<64x1xf32>
      %43 = arith.cmpf ogt, %41, %42 : vector<64x1xf32>
      %44 = tpu.reciprocal %41 {approx = true} : vector<64x1xf32> -> vector<64x1xf32>
      %cst_11 = arith.constant 0.000000e+00 : f32
      %45 = vector.broadcast %cst_11 : f32 to vector<64x1xf32>
      %46 = arith.select %43, %44, %45 : vector<64x1xi1>, vector<64x1xf32>
      %47 = vector.extract_strided_slice %13 {offsets = [0, 27], sizes = [64, 8], strides = [1, 1]} : vector<64x36xf32> to vector<64x8xf32>
      %48 = vector.broadcast %46 : vector<64x1xf32> to vector<64x8xf32>
      %49 = arith.mulf %47, %48 : vector<64x8xf32>
      %50 = tpu.concatenate %22, %31, %40, %49 in 1 : vector<64x8xf32>, vector<64x8xf32>, vector<64x8xf32>, vector<64x8xf32> -> vector<64x32xf32>
      %c0_12 = arith.constant 0 : index
      %c0_13 = arith.constant 0 : index
      %51 = vector.load %arg7[%c0_12, %c0_13] : memref<64x32xf32, #tpu.memory_space<vmem>>, vector<64x32xf32>
      tpu.vector_store %arg7[%c0_12, %c0_13], %50 {strides = array<i32>} : memref<64x32xf32, #tpu.memory_space<vmem>>, vector<64x32xf32>,
    } else {
    }
    return
  }
  func.func @transform_0(%arg0: i32, %arg1: i32, %arg2: memref<9xi32, #tpu.memory_space<smem>>) -> (i32, i32) {
    %c0_i32 = arith.constant 0 : i32
    %c0_i32_0 = arith.constant 0 : i32
    return %arg0, %c0_i32 : i32, i32
  }
  func.func @transform_1(%arg0: i32, %arg1: i32, %arg2: memref<9xi32, #tpu.memory_space<smem>>) -> (i32, i32) {
    %c0_i32 = arith.constant 0 : i32
    %c0_i32_0 = arith.constant 0 : i32
    return %c0_i32, %arg1 : i32, i32
  }
  func.func @transform_2(%arg0: i32, %arg1: i32, %arg2: memref<9xi32, #tpu.memory_space<smem>>) -> (i32, i32) {
    %c0_i32 = arith.constant 0 : i32
    %c0_i32_0 = arith.constant 0 : i32
    %c0_i32_1 = arith.constant 0 : i32
    return %c0_i32, %c0_i32_0 : i32, i32
  }
  func.func @transform_3(%arg0: i32, %arg1: i32, %arg2: memref<9xi32, #tpu.memory_space<smem>>) -> (i32, i32) {
    %c0_i32 = arith.constant 0 : i32
    return %arg0, %arg1 : i32, i32
  }
  func.func @transform_4(%arg0: i32, %arg1: i32, %arg2: memref<9xi32, #tpu.memory_space<smem>>) -> (i32, i32) {
    %c0_i32 = arith.constant 0 : i32
    %c0_i32_0 = arith.constant 0 : i32
    return %arg0, %c0_i32 : i32, i32
  }
}

</mosaic_0001>

<bundles_post_ra>
// kernel: tpu_custom_call.1
= control target key start
LH: loop header
LB: loop body
LE: loop exit
PB: predicated region body
PF: predicated region fallthrough
CT: control target
= control target key end

     0   :  { %s3307_s0 = inlined_call_operand.vmem [shape: s32[9], index: 0, kind: input, shape index: {}]   ;;  %s3308_s1 = inlined_call_operand.vmem [shape: f32[192,4], index: 1, kind: input, shape index: {}]   ;;  %s3309_s2 = inlined_call_operand.vmem [shape: f32[4,384], index: 2, kind: input, shape index: {}]   ;;  %s3310_s3 = inlined_call_operand.vmem [shape: f32[384,36], index: 3, kind: input, shape index: {}]   ;;  %s3311_s4 = inlined_call_operand.vmem [shape: s8[192,384], index: 4, kind: input, shape index: {}]   ;;  %s3312_s5 = inlined_call_operand.vmem [shape: f32[192,32], index: 5, kind: output, shape index: {}]  }
   0x1   :  { %s10_s20 = sshll.u32 %s3307_s0, 4  ;;  %s11_s20 = int_to_ptr.vmem [resolvable:$true] %s10_s20 }
   0x2   :  { %s2633_s21 = scalar_lea.vmem %s11_s20, 16  ;;  %p2638_p1 = scmp.lt.s32.totalorder %s11_s20, %s11_s20 }
   0x3   :  { %p2634_p0 = scmp.ne.s32.totalorder %s11_s20, %s2633_s21  ;;  %p2639_p2 = scmp.lt.s32.totalorder %s2633_s21, %s2633_s21 }
   0x5   :  { %p2640_p3 = por %p2639_p2, %p2638_p1 }
   0x7   :  { %p2641_p4 = pnand %p2640_p3, %p2634_p0 }
   0x9   :  { %2644 = shalt.err (!%p2641_p4)  }
   0xa   :  { %s2703_s22 = smov [#allocation4]  }
   0xb   :  { %13 = dma.vmem_to_smem %s11_s20, 16, %s2703_s22, [#allocation3] }
   0xc   :  { %2673 = dma.done.wait [#allocation3], 16 }
   0xd   :  { %2674 = vsyncadd [#allocation3], 4294967280 }
   0xe   :  { %15 = sfence }
   0xf   :  { %s2755_s23 = smov 0   ;;  %s2757_s24 = smov 0  }
  0x10   :  { %s2759_s25 = smov 0   ;;  %s2761_s0 = smov 0  }
  0x11   :  { %s2763_s26 = smov 0   ;;  %s2765_s27 = smov 0  }
  0x12   :  { %s2767_s28 = smov 0  }
  0x13 LB: > { %s30_s29 = sadd.s32 1, %s2693_s26  ;;  %s33_s30 = sadd.s32 1, %s2697_s27  ;;  %s2701_s28 = sphi %s2767_s28, %s21_s28   ;;  %s2697_s27 = sphi %s2765_s27, %s3318_s27   ;;  %s2693_s26 = sphi %s2763_s26, %s3317_s26   ;;  %s2689_s0 = sphi %s2761_s0, %s3316_s0   ;;  %s2685_s25 = sphi %s2759_s25, %s3315_s25   ;;  %s2681_s24 = sphi %s2757_s24, %s3314_s24   ;;  %s2677_s23 = sphi %s2755_s23, %s3313_s23  }
  0x14   : > { %p31_p5 = scmp.ge.s32.totalorder %s30_s29, 3  ;;  %p122_p6 = scmp.ne.s32.totalorder %s2681_s24, %s2677_s23 }
  0x15   : > { %p123_p7 = scmp.eq.s32.totalorder %s2701_s28, 0  ;;  %s115_s9 = sadd.s32 1, %s2681_s24 }
  0x16   : > { %s3320_s29 = smov (%p31_p5, %s30_s29), 0  ;;  %s3322_s30 = smov (!%p31_p5, %s33_s30), %s2697_s27 }
  0x17   : > { %p124_p8 = por %p123_p7, %p122_p6  ;;  %p35_p9 = scmp.ge.s32.totalorder %s3322_s30, 3 }
  0x18   : > { %s111_s6 = ssub.s32 %s2693_s26, %s3320_s29  ;;  %p1911_p11 = scmp.ge.s32.totalorder %s2701_s28, 9 }
  0x19   : > { %s3324_s30 = smov (%p35_p9, %s3322_s30), 0 }
  0x1a   : > { %s110_s7 = ssub.s32 %s2697_s27, %s3324_s30  ;;  %177 = sbr.rel (%p1911_p11) target bundleno = 41 (0x29), region = 20 }
  0x1b   : > { %s112_s8 = sor.u32 %s111_s6, %s110_s7 }
  0x1c   : > { %p113_p10 = scmp.eq.s32.totalorder %s112_s8, 0 }
  0x1e   : > { %s2806_s10 = scalar_select %p113_p10, %s2681_s24, %s115_s9  }
  0x21   : > { %196 = sbr.rel (!%p124_p8) target bundleno = 41 (0x29), region = 32  ;;  %s198_s11 = sand.u32 (%p124_p8), 1, %s2681_s24  }
  0x22   : > { %s2329_s12 = smul.u32 (%p124_p8), 6, %s2697_s27  ;;  %s1912_s13 = sshll.u32 (%p124_p8), %s198_s11, 4 }
  0x23   : > { %s200_s19 = scalar_lea.vmem (%p124_p8), [#allocation5], %s1912_s13 }
  0x24   : > { %s203_s14 = sadd.s32 (%p124_p8), %s2693_s26, %s2329_s12 }
  0x25   : > { %s1915_s15 = sshll.u32 (%p124_p8), %s203_s14, 3 }
  0x26   : > { %s205_s18 = scalar_lea.vmem (%p124_p8), %s3311_s4, %s1915_s15 }
  0x27   : > { %v235_v0 = vld [vmem:[%s205_s18] sm:$0xff] (%p124_p8)  ;;  %v237_v1 = vld [vmem:[%s205_s18 + $0x18] sm:$0xff] (%p124_p8) }
  0x28   : > { %236 = vst [vmem:[%s200_s19] sm:$0xff] %v235_v0  ;;  %238 = vst [vmem:[%s200_s19 + $0x8] sm:$0xff] %v237_v1 }
  0x29 PF: > { %p1916_p12 = scmp.ge.s32.totalorder %s2701_s28, 1  ;;  %p243_p13 = scmp.lt.s32.totalorder %s2701_s28, 10 }
  0x2b   : > { %p244_p0 = pnand %p1916_p12, %p243_p13 }
  0x2c   : > { %s250_s20 = sand.u32 (!%p244_p0), 1, %s2677_s23   ;;  %s1918_s21 = sshll.u32 (!%p244_p0), %s2689_s0, 3 }
  0x2d   : > { %247 = sbr.rel (%p244_p0) target bundleno = 1033 (0x409), region = 70  ;;  %s2819_s22 = sshll.u32 (!%p244_p0), %s250_s20, 4 }
  0x2e   : > { %p285_p1 = scmp.lt.s32.totalorder (!%p244_p0), %s1918_s21, 23  ;;  %p290_p2 = scmp.lt.s32.totalorder (!%p244_p0), %s2685_s25, 2 }
  0x2f   : > { %s252_s18 = scalar_lea.vmem (!%p244_p0), [#allocation5], %s2819_s22  ;;  %p1923_p3 = scmp.ne.s32.totalorder (!%p244_p0), %s2685_s25, 0 }
  0x34   : > { %s3326_s21 = smov (!%p285_p1, %s1918_s21), 23  ;;  %304 = sbr.rel (%p1923_p3) target bundleno = 59 (0x3b), region = 78 }
  0x35   : > { %s291_s6 = scalar_select %p290_p2, %s2685_s25, 2 }
  0x36   : > { %s1919_s7 = sshll.u32 %s3326_s21, 3  ;;  %vm305_vm0 = vcmask (!%p1923_p3), 293888   ;;  %v2704_v2 = vmov (!%p1923_p3), 0.0  }
  0x37   : > { %s2826_s11 = scalar_lea.vmem %s3308_s1, %s1919_s7  ;;  %s1920_s12 = sshll.u32 %s291_s6, 2  ;;  %306 = vst.msk [vmem:[#allocation2] sm:$0xff] (!%p1923_p3), %vm305_vm0, %v2704_v2  ;;  %307 = vst.msk [vmem:[#allocation2 + $0x8] sm:$0xff] (!%p1923_p3), %vm305_vm0, %v2704_v2 }
  0x38   : > { %s2831_s15 = scalar_lea.vmem %s3309_s2, %s1920_s12  ;;  %s2836_s17 = scalar_lea.vmem %s3312_s5, %s1919_s7  ;;  %308 = vst.msk [vmem:[#allocation2 + $0x10] sm:$0xff] (!%p1923_p3), %vm305_vm0, %v2704_v2  ;;  %309 = vst.msk [vmem:[#allocation2 + $0x18] sm:$0xff] (!%p1923_p3), %vm305_vm0, %v2704_v2 }
  0x39   : > { %310 = vst.msk [vmem:[#allocation2 + $0x20] sm:$0xff] (!%p1923_p3), %vm305_vm0, %v2704_v2  ;;  %311 = vst.msk [vmem:[#allocation2 + $0x28] sm:$0xff] (!%p1923_p3), %vm305_vm0, %v2704_v2 }
  0x3a   : > { %312 = vst.msk [vmem:[#allocation2 + $0x30] sm:$0xff] (!%p1923_p3), %vm305_vm0, %v2704_v2  ;;  %313 = vst.msk [vmem:[#allocation2 + $0x38] sm:$0xff] (!%p1923_p3), %vm305_vm0, %v2704_v2 }
  0x3b PF: > { %s314_s19 = smul.u32 3, %s2689_s0 }
  0x3d   : > { %s315_s20 = sadd.s32 %s2685_s25, %s314_s19 }
  0x3e   : > { %s316_s21 = sld [smem:[#allocation4 + %s315_s20]] }
  0x44   : > { %p1924_p4 = scmp.le.s32.totalorder %s316_s21, 0 }
  0x45   : > { %v2843_v3 = vld [vmem:[%s2826_s11 + $0x8] sm:$0xff] (!%p1924_p4)  ;;  %s1925_s6 = sshll.u32 (!%p1924_p4), %s2685_s25, 7  ;;  %v2705_v4 = vmov (!%p1924_p4), 0   ;;  %v2706_v5 = vmov (!%p1924_p4), 1   ;;  %v2857_v8 = vld [vmem:[%s2826_s11] sm:$0xff] (!%p1924_p4)  ;;  %s2707_s0 = smov (!%p1924_p4), 119   ;;  %v406_v48 = vlaneseq (!%p1924_p4) }
  0x46   : > { %320 = sbr.rel (%p1924_p4) target bundleno = 705 (0x2c1), region = 82  ;;  %2405 = vset.pattern.permute.xlu1 (!%p1924_p4), %v2705_v4  ;;  %s2850_s9 = scalar_lea.vmem (!%p1924_p4), %s3310_s3, %s1925_s6  ;;  %2417 = vset.pattern.permute.xlu0 (!%p1924_p4), %v2706_v5  ;;  %v2888_v23 = vld [vmem:[%s2826_s11 + $0x18] sm:$0xff] (!%p1924_p4)  ;;  %v2910_v34 = vld [vmem:[%s2826_s11 + $0x10] sm:$0xff] (!%p1924_p4)  ;;  %v344_v37 = vld [vmem:[%s2826_s11 + $0x28] sm:$0xff] (!%p1924_p4)  ;;  %v2709_v44 = vmov (!%p1924_p4), 2   ;;  %v2711_v46 = vmov (!%p1924_p4), 3  }
  0x47   : > { %373 = vperm.xlu1 (!%p1924_p4), %2405, %v2843_v3   ;;  %v350_v6 = vld [vmem:[%s2850_s9] sm:$0xff] (!%p1924_p4)  ;;  %v351_v7 = vld [vmem:[%s2850_s9 + $0x8] sm:$0xff] (!%p1924_p4)  ;;  %v352_v10 = vld [vmem:[%s2850_s9 + $0x10] sm:$0xff] (!%p1924_p4)  ;;  %s2708_s12 = smov (!%p1924_p4), 110   ;;  %s2710_s13 = smov (!%p1924_p4), 101   ;;  %v2962_v52 = vshrl.u32 (!%p1924_p4), %v406_v48, 7 }
  0x48   : > { %v2859_v9 = vpack.i.bf16 (!%p1924_p4), %v351_v7, %v350_v6  ;;  %v353_v11 = vld [vmem:[%s2850_s9 + $0x18] sm:$0xff] (!%p1924_p4)  ;;  %v358_v12 = vld [vmem:[%s2850_s9 + $0x40] sm:$0xff] (!%p1924_p4)  ;;  %v359_v13 = vld [vmem:[%s2850_s9 + $0x48] sm:$0xff] (!%p1924_p4)  ;;  %v2201_v22 = vpack.c.bf16 (!%p1924_p4), %v351_v7, %v350_v6  ;;  %s2712_s22 = smov (!%p1924_p4), 9   ;;  %s2714_s14 = smov (!%p1924_p4), 27   ;;  %vm1426_vm1 = vcmask (!%p1924_p4), 72704  }
  0x49   : > { %v354_v14 = vld [vmem:[%s2850_s9 + $0x20] sm:$0xff] (!%p1924_p4)  ;;  %v355_v15 = vld [vmem:[%s2850_s9 + $0x28] sm:$0xff] (!%p1924_p4)  ;;  %v2867_v16 = vpack.i.bf16 (!%p1924_p4), %v353_v11, %v352_v10  ;;  %v356_v17 = vld [vmem:[%s2850_s9 + $0x30] sm:$0xff] (!%p1924_p4)  ;;  %v2875_v20 = vpack.i.bf16 (!%p1924_p4), %v359_v13, %v358_v12  ;;  %v2205_v27 = vpack.c.bf16 (!%p1924_p4), %v353_v11, %v352_v10  ;;  %v2217_v38 = vpack.c.bf16 (!%p1924_p4), %v359_v13, %v358_v12 }
  0x4a   : > { %2408 = vrot.lane.b32.xlu0 (!%p1924_p4), %v2859_v9, %s2707_s0  ;;  %v357_v18 = vld [vmem:[%s2850_s9 + $0x38] sm:$0xff] (!%p1924_p4)  ;;  %v2873_v19 = vpack.i.bf16 (!%p1924_p4), %v355_v15, %v354_v14  ;;  %v360_v24 = vld [vmem:[%s2850_s9 + $0x50] sm:$0xff] (!%p1924_p4)  ;;  %2202 = vmatprep.subr.bf16.mxu0 (!%p1924_p4), %v2201_v22  ;;  %v362_v28 = vld [vmem:[%s2850_s9 + $0x60] sm:$0xff] (!%p1924_p4)  ;;  %v2209_v31 = vpack.c.bf16 (!%p1924_p4), %v355_v15, %v354_v14  ;;  %v605_v53 = vsub.s32 (!%p1924_p4), 1, %v2962_v52  ;;  %v408_v54 = vsub.s32 (!%p1924_p4), 0, %v2962_v52 }
  0x4b   : > { %2406 = vset.pattern.permute.xlu1 (!%p1924_p4), %v2706_v5  ;;  %v2878_v21 = vpack.i.bf16 (!%p1924_p4), %v357_v18, %v356_v17  ;;  %v361_v25 = vld [vmem:[%s2850_s9 + $0x58] sm:$0xff] (!%p1924_p4)  ;;  %2204 = vmatpush3.bf16.msra.mxu0 (!%p1924_p4), %v2201_v22  ;;  %v363_v29 = vld [vmem:[%s2850_s9 + $0x68] sm:$0xff] (!%p1924_p4)  ;;  %v364_v32 = vld [vmem:[%s2850_s9 + $0x70] sm:$0xff] (!%p1924_p4)  ;;  %v2213_v36 = vpack.c.bf16 (!%p1924_p4), %v357_v18, %v356_v17  ;;  %vm1435_vm2 = vcmask (!%p1924_p4), 146432   ;;  %vm1444_vm3 = vcmask (!%p1924_p4), 220160  }
  0x4c   : > { %572 = vperm.xlu1 (!%p1924_p4), %2406, %v2857_v8   ;;  %v2894_v26 = vpack.i.bf16 (!%p1924_p4), %v361_v25, %v360_v24  ;;  %2206 = vmatprep.subr.bf16.mxu0 (!%p1924_p4), %v2205_v27  ;;  %v2901_v30 = vpack.i.bf16 (!%p1924_p4), %v363_v29, %v362_v28  ;;  %v365_v33 = vld [vmem:[%s2850_s9 + $0x78] sm:$0xff] (!%p1924_p4)  ;;  %v2221_v39 = vpack.c.bf16 (!%p1924_p4), %v361_v25, %v360_v24  ;;  %v343_v41 = vld [vmem:[%s2826_s11 + $0x20] sm:$0xff] (!%p1924_p4)  ;;  %v345_v45 = vld [vmem:[%s2826_s11 + $0x30] sm:$0xff] (!%p1924_p4)  ;;  %vm1461_vm4 = vcmask (!%p1924_p4), 293888  }
  0x4d   : > { %v2912_v35 = vpack.i.bf16 %v365_v33, %v364_v32  ;;  %v346_v40 = vld [vmem:[%s2826_s11 + $0x38] sm:$0xff]  ;;  %v2225_v42 = vpack.c.bf16 %v363_v29, %v362_v28  ;;  %v2229_v43 = vpack.c.bf16 %v365_v33, %v364_v32  ;;  %v2969_v55 = vld [vmem:[%s2831_s15] sm:$0xf]  ;;  %s2713_s11 = smov 18  }
  0x4e   : > { %576 = vperm.xlu0 %2417, %v2843_v3   ;;  %v2972_v57 = vrot.slane %v2969_v55, %v605_v53  ;;  %v2975_v58 = vrot.slane %v2969_v55, %v408_v54  ;;  %v2989_v24 = vld [vmem:[%s252_s18] sm:$0xff] }
  0x4f   : > { %2208 = vmatpush3.bf16.msra.mxu0 %v2205_v27  ;;  %v323_v25 = vunpack.c.0.s8 %v2989_v24 }
  0x50   : > { %2413 = vrot.lane.b32.xlu1 %v2867_v16, %s2707_s0  ;;  %2210 = vmatprep.subr.bf16.mxu0 %v2209_v31 }
  0x51   : > { %2438 = vset.pattern.permute.xlu1 %v2705_v4 }
  0x52   : > { %2429 = vrot.lane.b32.xlu0 %v2875_v20, %s2707_s0 }
  0x53   : > { %2212 = vmatpush3.bf16.msra.mxu0 %v2209_v31 }
  0x54   : > { %2419 = vrot.lane.b32.xlu1 %v2873_v19, %s2707_s0  ;;  %2214 = vmatprep.subr.bf16.mxu0 %v2213_v36 }
  0x56   : > { %584 = vperm.xlu0 %2417, %v2888_v23  }
  0x57   : > { %2216 = vmatpush3.bf16.msra.mxu0 %v2213_v36 }
  0x58   : > { %2424 = vrot.lane.b32.xlu1 %v2878_v21, %s2707_s0  ;;  %2218 = vmatprep.subr.bf16.mxu0 %v2217_v38 }
  0x5a   : > { %2440 = vset.pattern.permute.xlu0 %v2705_v4 }
  0x5b   : > { %368 = vperm.xlu0 %2440, %v2857_v8   ;;  %2220 = vmatpush3.bf16.msra.mxu0 %v2217_v38 }
  0x5c   : > { %2434 = vrot.lane.b32.xlu1 %v2894_v26, %s2707_s0  ;;  %2222 = vmatprep.subr.bf16.mxu0 %v2221_v39 }
  0x5f   : > { %378 = vperm.xlu0 %2440, %v2910_v34   ;;  %2224 = vmatpush3.bf16.msra.mxu0 %v2221_v39 }
  0x60   : > { %383 = vperm.xlu1 %2438, %v2888_v23   ;;  %2226 = vmatprep.subr.bf16.mxu0 %v2225_v42 }
  0x63   : > { %393 = vperm.xlu0 %2440, %v344_v37   ;;  %2228 = vmatpush3.bf16.msra.mxu0 %v2225_v42 }
  0x64   : > { %2439 = vset.pattern.permute.xlu1 %v2706_v5  ;;  %2230 = vmatprep.subr.bf16.mxu0 %v2229_v43 }
  0x65   : > { %580 = vperm.xlu1 %2439, %v2910_v34  }
  0x67   : > { %2449 = vrot.lane.b32.xlu0 %v2912_v35, %s2707_s0  ;;  %2232 = vmatpush3.bf16.msra.mxu0 %v2229_v43 }
  0x69   : > { %2442 = vrot.lane.b32.xlu1 %v2901_v30, %s2707_s0 }
  0x6a   : > { %2446 = vset.pattern.permute.xlu1 %v2705_v4 }
  0x6b   : > { %403 = vperm.xlu0 %2440, %v346_v40  }
  0x6d   : > { %388 = vperm.xlu1 %2446, %v343_v41  }
  0x6f   : > { %2456 = vrot.lane.b32.xlu0 %v2859_v9, %s2708_s12 }
  0x70   : > { %2466 = vset.pattern.permute.xlu0 %v2709_v44 }
  0x71   : > { %2447 = vset.pattern.permute.xlu1 %v2706_v5 }
  0x72   : > { %588 = vperm.xlu1 %2447, %v343_v41  }
  0x73   : > { %2461 = vrot.lane.b32.xlu0 %v2859_v9, %s2710_s13 }
  0x76   : > { %592 = vperm.xlu1 %2447, %v344_v37  }
  0x77   : > { %837 = vperm.xlu0 %2466, %v2843_v3  }
  0x7a   : > { %2453 = vset.pattern.permute.xlu1 %v2705_v4 }
  0x7b   : > { %398 = vperm.xlu1 %2453, %v345_v45   ;;  %845 = vperm.xlu0 %2466, %v2888_v23  }
  0x7f   : > { %2454 = vset.pattern.permute.xlu1 %v2706_v5  ;;  %853 = vperm.xlu0 %2466, %v344_v37  }
  0x80   : > { %596 = vperm.xlu1 %2454, %v345_v45  }
  0x83   : > { %861 = vperm.xlu0 %2466, %v346_v40  }
  0x84   : > { %600 = vperm.xlu1 %2454, %v346_v40  }
  0x87   : > { %2503 = vset.pattern.permute.xlu0 %v2711_v46 }
  0x88   : > { %2465 = vset.pattern.permute.xlu1 %v2709_v44  ;;  %1082 = vperm.xlu0 %2503, %v2843_v3  }
  0x89   : > { %833 = vperm.xlu1 %2465, %v2857_v8  }
  0x8c   : > { %1090 = vperm.xlu0 %2503, %v2888_v23  }
  0x8d   : > { %2468 = vrot.lane.b32.xlu1 %v2867_v16, %s2708_s12 }
  0x8e   : > { %2472 = vset.pattern.permute.xlu1 %v2711_v46 }
  0x90   : > { %1098 = vperm.xlu0 %2503, %v344_v37   ;;  %v2993_v37 = vcvt.s32.f32 %v323_v25 }
  0x91   : > { %1078 = vperm.xlu1 %2472, %v2857_v8  }
  0x94   : > { %1106 = vperm.xlu0 %2503, %v346_v40  }
  0x95   : > { %2474 = vrot.lane.b32.xlu1 %v2867_v16, %s2710_s13 }
  0x96   : > { %2478 = vset.pattern.permute.xlu1 %v2709_v44 }
  0x98   : > { %2521 = vrot.lane.b32.xlu0 %v2894_v26, %s2710_s13 }
  0x99   : > { %841 = vperm.xlu1 %2478, %v2910_v34  }
  0x9c   : > { %2531 = vrot.lane.b32.xlu0 %v2901_v30, %s2710_s13 }
  0x9d   : > { %2480 = vrot.lane.b32.xlu1 %v2873_v19, %s2708_s12 }
  0x9e   : > { %2484 = vset.pattern.permute.xlu1 %v2711_v46 }
  0xa0   : > { %2541 = vrot.lane.b32.xlu0 %v2912_v35, %s2710_s13 }
  0xa1   : > { %1086 = vperm.xlu1 %2484, %v2910_v34  }
  0xa5   : > { %2486 = vrot.lane.b32.xlu1 %v2873_v19, %s2710_s13 }
  0xa6   : > { %2490 = vset.pattern.permute.xlu1 %v2709_v44 }
  0xa9   : > { %849 = vperm.xlu1 %2490, %v343_v41  }
  0xad   : > { %2492 = vrot.lane.b32.xlu1 %v2878_v21, %s2708_s12 }
  0xae   : > { %2496 = vset.pattern.permute.xlu1 %v2711_v46 }
  0xb1   : > { %1094 = vperm.xlu1 %2496, %v343_v41  }
  0xb5   : > { %2498 = vrot.lane.b32.xlu1 %v2878_v21, %s2710_s13 }
  0xb6   : > { %2502 = vset.pattern.permute.xlu1 %v2709_v44 }
  0xb9   : > { %857 = vperm.xlu1 %2502, %v345_v45  }
  0xbc   : > { %v2409_v47 = vpop.permute.xlu0 %2408 }
  0xbd   : > { %2505 = vrot.lane.b32.xlu1 %v2875_v20, %s2708_s12  ;;  %v2411_v49 = vunpack.i.h.bf16 %v2409_v47  ;;  %v2410_v50 = vunpack.i.l.bf16 %v2409_v47 }
  0xbe   : > { %2509 = vset.pattern.permute.xlu1 %v2711_v46 }
  0xbf   : > { %v2233_v51 = vpack.c.bf16 %v2411_v49, %v2410_v50 }
  0xc1   : > { %1102 = vperm.xlu1 %2509, %v345_v45   ;;  %2234 = vmatprep.subr.bf16.mxu1 %v2233_v51 }
  0xc2   : > { %2236 = vmatpush3.bf16.msra.mxu1 %v2233_v51 }
  0xc5   : > { %2511 = vrot.lane.b32.xlu1 %v2875_v20, %s2710_s13 }
  0xc6   : > { %v374_v56 = vpop.permute.xlu1 %373 }
  0xc7   : > { %v411_v61 = vadd.f32 %v2975_v58, %v374_v56 }
  0xc9   : > { %2516 = vrot.lane.b32.xlu1 %v2894_v26, %s2708_s12  ;;  %v419_v5 = vmul.f32 0.2, %v411_v61 }
  0xcb   : > { %v573_v59 = vpop.permute.xlu1 %572  ;;  %v427_v14 = vmax.f32 %v411_v61, %v419_v5 }
  0xcc   : > { %v607_v60 = vadd.f32 %v2972_v57, %v573_v59 }
  0xcd   : > { %v577_v62 = vpop.permute.xlu0 %576  ;;  %2526 = vrot.lane.b32.xlu1 %v2901_v30, %s2708_s12  ;;  %v435_v26 = vsub.f32 0.0, %v427_v14  ;;  %v324_v14 = vunpack.c.1.s8 %v2989_v24 }
  0xce   : > { %v615_v63 = vmul.f32 0.2, %v607_v60  ;;  %v608_v2 = vadd.f32 %v2972_v57, %v577_v62 }
  0xcf   : > { %v2414_v0 = vpop.permute.xlu1 %2413  ;;  %v444_v38 = vmul.f32 1.442695, %v435_v26 }
  0xd0   : > { %v623_v1 = vmax.f32 %v607_v60, %v615_v63  ;;  %v2416_v3 = vunpack.i.h.bf16 %v2414_v0  ;;  %v2415_v4 = vunpack.i.l.bf16 %v2414_v0  ;;  %v616_v11 = vmul.f32 0.2, %v608_v2 }
  0xd1   : > { %v2430_v6 = vpop.permute.xlu0 %2429  ;;  %2536 = vrot.lane.b32.xlu1 %v2912_v35, %s2708_s12 }
  0xd2   : > { %v631_v7 = vsub.f32 0.0, %v623_v1  ;;  %v2237_v8 = vpack.c.bf16 %v2416_v3, %v2415_v4  ;;  %v2432_v16 = vunpack.i.h.bf16 %v2430_v6  ;;  %v2431_v17 = vunpack.i.l.bf16 %v2430_v6 }
  0xd3   : > { %v2420_v9 = vpop.permute.xlu1 %2419  ;;  %v624_v21 = vmax.f32 %v608_v2, %v616_v11 }
  0xd4   : > { %v639_v10 = vmul.f32 1.442695, %v631_v7  ;;  %v2422_v12 = vunpack.i.h.bf16 %v2420_v9  ;;  %v2421_v13 = vunpack.i.l.bf16 %v2420_v9  ;;  %2238 = vmatprep.subr.bf16.mxu1 %v2237_v8  ;;  %v2249_v27 = vpack.c.bf16 %v2432_v16, %v2431_v17 }
  0xd5   : > { %2240 = vmatpush3.bf16.msra.mxu1 %v2237_v8  ;;  %v585_v15 = vpop.permute.xlu0 %584  ;;  %v632_v33 = vsub.f32 0.0, %v624_v21 }
  0xd6   : > { %2545 = vpow2.f32 %v639_v10  ;;  %v2241_v18 = vpack.c.bf16 %v2422_v12, %v2421_v13  ;;  %v610_v19 = vadd.f32 %v2972_v57, %v585_v15 }
  0xd7   : > { %v2425_v20 = vpop.permute.xlu1 %2424  ;;  %v641_v45 = vmul.f32 1.442695, %v632_v33  ;;  %2547 = vpow2.f32 %v444_v38 }
  0xd8   : > { %v2427_v22 = vunpack.i.h.bf16 %v2425_v20  ;;  %v2426_v23 = vunpack.i.l.bf16 %v2425_v20  ;;  %2242 = vmatprep.subr.bf16.mxu1 %v2241_v18  ;;  %v618_v30 = vmul.f32 0.2, %v610_v19 }
  0xd9   : > { %2244 = vmatpush3.bf16.msra.mxu1 %v2241_v18  ;;  %2549 = vpow2.f32 %v641_v45  ;;  %v325_v18 = vunpack.c.2.s8 %v2989_v24 }
  0xda   : > { %v2245_v28 = vpack.c.bf16 %v2427_v22, %v2426_v23  ;;  %v369_v29 = vpop.permute.xlu0 %368  ;;  %v626_v40 = vmax.f32 %v610_v19, %v618_v30 }
  0xdb   : > { %v410_v31 = vadd.f32 %v2975_v58, %v369_v29  ;;  %v2435_v32 = vpop.permute.xlu1 %2434  ;;  %v3008_v38 = vcvt.s32.f32 %v325_v18 }
  0xdc   : > { %v2437_v34 = vunpack.i.h.bf16 %v2435_v32  ;;  %v2436_v35 = vunpack.i.l.bf16 %v2435_v32  ;;  %2246 = vmatprep.subr.bf16.mxu1 %v2245_v28  ;;  %v634_v54 = vsub.f32 0.0, %v626_v40 }
  0xdd   : > { %v418_v36 = vmul.f32 0.2, %v410_v31  ;;  %2248 = vmatpush3.bf16.msra.mxu1 %v2245_v28  ;;  %v326_v28 = vunpack.c.3.s8 %v2989_v24 }
  0xde   : > { %v379_v39 = vpop.permute.xlu0 %378  ;;  %2250 = vmatprep.subr.bf16.mxu1 %v2249_v27  ;;  %v2253_v46 = vpack.c.bf16 %v2437_v34, %v2436_v35  ;;  %v645_v4 = vmul.f32 1.442695, %v634_v54 }
  0xdf   : > { %v426_v41 = vmax.f32 %v410_v31, %v418_v36  ;;  %v412_v42 = vadd.f32 %v2975_v58, %v379_v39  ;;  %v384_v43 = vpop.permute.xlu1 %383 }
  0xe0   : > { %v2546_v44 = vpop.eup %2545  ;;  %v413_v47 = vadd.f32 %v2975_v58, %v384_v43 }
  0xe1   : > { %v434_v48 = vsub.f32 0.0, %v426_v41  ;;  %v420_v49 = vmul.f32 0.2, %v412_v42  ;;  %2252 = vmatpush3.bf16.msra.mxu1 %v2249_v27  ;;  %v655_v50 = vmul.f32 %v2546_v44, %v2993_v37  ;;  %v2548_v19 = vpop.eup %2547  ;;  %v3003_v27 = vcvt.s32.f32 %v324_v14 }
  0xe2   : > { %v421_v51 = vmul.f32 0.2, %v413_v47  ;;  %2254 = vmatprep.subr.bf16.mxu1 %v2253_v46  ;;  %v394_v53 = vpop.permute.xlu0 %393 }
  0xe3   : > { %v442_v56 = vmul.f32 1.442695, %v434_v48  ;;  %v428_v59 = vmax.f32 %v412_v42, %v420_v49  ;;  %2101 = vmatprep.mubr.f32.mxu1 %v655_v50  ;;  %v415_v60 = vadd.f32 %v2975_v58, %v394_v53  ;;  %v2550_v29 = vpop.eup %2549  ;;  %v459_v24 = vmul.f32 %v2548_v19, %v3003_v27 }
  0xe4   : > { %v429_v61 = vmax.f32 %v413_v47, %v421_v51  ;;  %v581_v62 = vpop.permute.xlu1 %580  ;;  %v3011_v42 = vcvt.s32.f32 %v326_v28  ;;  %v656_v44 = vmul.f32 %v2550_v29, %v3003_v27  ;;  %v866_v29 = vsub.s32 2, %v2962_v52 }
  0xe5   : > { %2551 = vpow2.f32 %v442_v56  ;;  %v436_v63 = vsub.f32 0.0, %v428_v59  ;;  %v609_v0 = vadd.f32 %v2972_v57, %v581_v62  ;;  %2256 = vmatpush3.bf16.msra.mxu1 %v2253_v46  ;;  %v423_v1 = vmul.f32 0.2, %v415_v60 }
  0xe6   : > { %v437_v2 = vsub.f32 0.0, %v429_v61  ;;  %v2450_v3 = vpop.permute.xlu0 %2449 }
  0xe7   : > { %v446_v5 = vmul.f32 1.442695, %v436_v63  ;;  %v617_v6 = vmul.f32 0.2, %v609_v0  ;;  %v431_v8 = vmax.f32 %v415_v60, %v423_v1  ;;  %v2452_v10 = vunpack.i.h.bf16 %v2450_v3 }
  0xe8   : > { %v448_v7 = vmul.f32 1.442695, %v437_v2  ;;  %v2443_v9 = vpop.permute.xlu1 %2442  ;;  %v2451_v11 = vunpack.i.l.bf16 %v2450_v3  ;;  %v3020_v3 = vld [vmem:[%s252_s18 + $0x8] sm:$0xff] }
  0xe9   : > { %2553 = vpow2.f32 %v446_v5  ;;  %v625_v12 = vmax.f32 %v609_v0, %v617_v6  ;;  %v2445_v13 = vunpack.i.h.bf16 %v2443_v9  ;;  %v2444_v15 = vunpack.i.l.bf16 %v2443_v9 }
  0xea   : > { %2555 = vpow2.f32 %v448_v7  ;;  %v404_v16 = vpop.permute.xlu0 %403  ;;  %v439_v20 = vsub.f32 0.0, %v431_v8  ;;  %v2261_v22 = vpack.c.bf16 %v2452_v10, %v2451_v11  ;;  %v327_v8 = vunpack.c.0.s8 %v3020_v3 }
  0xeb   : > { %v633_v17 = vsub.f32 0.0, %v625_v12  ;;  %2557 = vpow2.f32 %v645_v4  ;;  %v2257_v21 = vpack.c.bf16 %v2445_v13, %v2444_v15  ;;  %v417_v30 = vadd.f32 %v2975_v58, %v404_v16 }
  0xec   : > { %v389_v23 = vpop.permute.xlu1 %388  ;;  %v452_v35 = vmul.f32 1.442695, %v439_v20  ;;  %v328_v15 = vunpack.c.1.s8 %v3020_v3 }
  0xed   : > { %v643_v25 = vmul.f32 1.442695, %v633_v17  ;;  %v414_v26 = vadd.f32 %v2975_v58, %v389_v23  ;;  %2258 = vmatprep.subr.bf16.mxu1 %v2257_v21  ;;  %v425_v45 = vmul.f32 0.2, %v417_v30 }
  0xee   : > { %v2457_v31 = vpop.permute.xlu0 %2456  ;;  %2260 = vmatpush3.bf16.msra.mxu1 %v2257_v21  ;;  %v3027_v21 = vcvt.s32.f32 %v327_v8 }
  0xef   : > { %v2552_v32 = vpop.eup %2551  ;;  %2559 = vpow2.f32 %v643_v25  ;;  %v422_v33 = vmul.f32 0.2, %v414_v26  ;;  %v2459_v34 = vunpack.i.h.bf16 %v2457_v31  ;;  %2262 = vmatprep.subr.bf16.mxu1 %v2261_v22  ;;  %v2458_v39 = vunpack.i.l.bf16 %v2457_v31 }
  0xf0   : > { %v458_v36 = vmul.f32 %v2552_v32, %v2993_v37  ;;  %2561 = vpow2.f32 %v452_v35  ;;  %v433_v2 = vmax.f32 %v417_v30, %v425_v45  ;;  %v3029_v25 = vcvt.s32.f32 %v328_v15 }
  0xf1   : > { %v430_v40 = vmax.f32 %v414_v26, %v422_v33  ;;  %v589_v41 = vpop.permute.xlu1 %588  ;;  %v2265_v46 = vpack.c.bf16 %v2459_v34, %v2458_v39  ;;  %v3037_v39 = vrot.slane %v2969_v55, %v866_v29 }
  0xf2   : > { %v611_v43 = vadd.f32 %v2972_v57, %v589_v41  ;;  %2057 = vmatprep.mubr.f32.mxu0 %v458_v36  ;;  %v2462_v47 = vpop.permute.xlu0 %2461  ;;  %2264 = vmatpush3.bf16.msra.mxu1 %v2261_v22  ;;  %v441_v13 = vsub.f32 0.0, %v433_v2 }
  0xf3   : > { %v2554_v48 = vpop.eup %2553  ;;  %v438_v49 = vsub.f32 0.0, %v430_v40  ;;  %2058 = vmatmul.mubr.f32.vlgmr.msra.gmra.mrb[0].mxu0 %v459_v24  ;;  %v2464_v50 = vunpack.i.h.bf16 %v2462_v47  ;;  %v2463_v51 = vunpack.i.l.bf16 %v2462_v47  ;;  %2266 = vmatprep.subr.bf16.mxu0 %v2265_v46  ;;  %v1111_v47 = vsub.s32 3, %v2962_v52 }
  0xf4   : > { %v2556_v53 = vpop.eup %2555  ;;  %v619_v54 = vmul.f32 0.2, %v611_v43  ;;  %v460_v56 = vmul.f32 %v2554_v48, %v3008_v38  ;;  %2268 = vmatpush3.bf16.msra.mxu0 %v2265_v46  ;;  %v456_v20 = vmul.f32 1.442695, %v441_v13  ;;  %v329_v48 = vunpack.c.2.s8 %v3020_v3 }
  0xf5   : > { %v450_v59 = vmul.f32 1.442695, %v438_v49  ;;  %v593_v60 = vpop.permute.xlu1 %592  ;;  %v461_v61 = vmul.f32 %v2556_v53, %v3011_v42  ;;  %v2297_v62 = vpack.c.bf16 %v2464_v50, %v2463_v51  ;;  %v2558_v63 = vpop.eup %2557  ;;  %2102 = vmatmul.mubr.f32.vlgmr.msra.gmra.mrb[0].mxu1 %v656_v44  ;;  %v330_v49 = vunpack.c.3.s8 %v3020_v3 }
  0xf6   : > { %v627_v0 = vmax.f32 %v611_v43, %v619_v54  ;;  %v612_v1 = vadd.f32 %v2972_v57, %v593_v60  ;;  %2060 = vmatprep.mubr.f32.mxu0 %v460_v56  ;;  %v658_v7 = vmul.f32 %v2558_v63, %v3011_v42  ;;  %v3048_v52 = vcvt.s32.f32 %v329_v48 }
  0xf7   : > { %2563 = vpow2.f32 %v450_v59  ;;  %2061 = vmatmul.mubr.f32.gmra.mrb[2].mxu0 %v461_v61  ;;  %2298 = vmatprep.subr.bf16.mxu1 %v2297_v62  ;;  %v3046_v61 = vrot.slane %v2969_v55, %v1111_v47  ;;  %v3050_v2 = vcvt.s32.f32 %v330_v49 }
  0xf8   : > { %v635_v4 = vsub.f32 0.0, %v627_v0  ;;  %v620_v5 = vmul.f32 0.2, %v612_v1  ;;  %2300 = vmatpush3.bf16.msra.mxu1 %v2297_v62  ;;  %v838_v62 = vpop.permute.xlu0 %837 }
  0xf9   : > { %v2560_v6 = vpop.eup %2559  ;;  %v869_v47 = vadd.f32 %v3037_v39, %v838_v62 }
  0xfa   : > { %v647_v9 = vmul.f32 1.442695, %v635_v4  ;;  %v628_v10 = vmax.f32 %v612_v1, %v620_v5  ;;  %v399_v11 = vpop.permute.xlu1 %398  ;;  %v657_v12 = vmul.f32 %v2560_v6, %v3008_v38  ;;  %v2562_v18 = vpop.eup %2561 }
  0xfb   : > { %v416_v14 = vadd.f32 %v2975_v58, %v399_v11  ;;  %v463_v30 = vmul.f32 %v2562_v18, %v3029_v25 }
  0xfc   : > { %2565 = vpow2.f32 %v647_v9  ;;  %v636_v16 = vsub.f32 0.0, %v628_v10  ;;  %2104 = vmatprep.mubr.f32.mxu1 %v657_v12  ;;  %v846_v10 = vpop.permute.xlu0 %845 }
  0xfd   : > { %v424_v17 = vmul.f32 0.2, %v416_v14  ;;  %2105 = vmatmul.mubr.f32.gmra.mrb[2].mxu1 %v658_v7 }
  0xfe   : > { %v649_v19 = vmul.f32 1.442695, %v636_v16 }
  0xff   : > { %v432_v22 = vmax.f32 %v416_v14, %v424_v17  ;;  %v597_v23 = vpop.permute.xlu1 %596 }
 0x100   : > { %2567 = vpow2.f32 %v649_v19  ;;  %v613_v26 = vadd.f32 %v2972_v57, %v597_v23  ;;  %v854_v23 = vpop.permute.xlu0 %853 }
 0x101   : > { %v2564_v58 = vpop.eup %2563  ;;  %v440_v28 = vsub.f32 0.0, %v432_v22  ;;  %2569 = vpow2.f32 %v456_v20  ;;  %v873_v62 = vadd.f32 %v3037_v39, %v854_v23 }
 0x102   : > { %v621_v31 = vmul.f32 0.2, %v613_v26  ;;  %v462_v32 = vmul.f32 %v2564_v58, %v3027_v21 }
 0x103   : > { %v454_v33 = vmul.f32 1.442695, %v440_v28  ;;  %v601_v34 = vpop.permute.xlu1 %600 }
 0x104   : > { %v629_v35 = vmax.f32 %v613_v26, %v621_v31  ;;  %v614_v36 = vadd.f32 %v2972_v57, %v601_v34  ;;  %2063 = vmatprep.mubr.f32.mxu0 %v462_v32 }
 0x105   : > { %2571 = vpow2.f32 %v454_v33  ;;  %2064 = vmatmul.mubr.f32.gmra.mrb[4].mxu0 %v463_v30  ;;  %v862_v33 = vpop.permute.xlu0 %861 }
 0x106   : > { %v2566_v40 = vpop.eup %2565  ;;  %v637_v41 = vsub.f32 0.0, %v629_v35  ;;  %v622_v24 = vmul.f32 0.2, %v614_v36 }
 0x107   : > { %v659_v43 = vmul.f32 %v2566_v40, %v3027_v21 }
 0x108   : > { %v651_v44 = vmul.f32 1.442695, %v637_v41  ;;  %v630_v45 = vmax.f32 %v614_v36, %v622_v24  ;;  %v834_v46 = vpop.permute.xlu1 %833 }
 0x109   : > { %v868_v57 = vadd.f32 %v3037_v39, %v834_v46  ;;  %2107 = vmatprep.mubr.f32.mxu1 %v659_v43  ;;  %v1083_v40 = vpop.permute.xlu0 %1082 }
 0x10a   : > { %v2568_v50 = vpop.eup %2567  ;;  %2573 = vpow2.f32 %v651_v44  ;;  %v638_v51 = vsub.f32 0.0, %v630_v45 }
 0x10b   : > { %v876_v53 = vmul.f32 0.2, %v868_v57  ;;  %v660_v54 = vmul.f32 %v2568_v50, %v3029_v25  ;;  %v2570_v56 = vpop.eup %2569 }
 0x10c   : > { %v653_v59 = vmul.f32 1.442695, %v638_v51  ;;  %v2469_v60 = vpop.permute.xlu1 %2468  ;;  %v465_v6 = vmul.f32 %v2570_v56, %v3050_v2  ;;  %v877_v51 = vmul.f32 0.2, %v869_v47 }
 0x10d   : > { %v884_v63 = vmax.f32 %v868_v57, %v876_v53  ;;  %v2471_v0 = vunpack.i.h.bf16 %v2469_v60  ;;  %v2470_v1 = vunpack.i.l.bf16 %v2469_v60  ;;  %2108 = vmatmul.mubr.f32.gmra.mrb[4].mxu1 %v660_v54  ;;  %v1091_v48 = vpop.permute.xlu0 %1090 }
 0x10e   : > { %2575 = vpow2.f32 %v653_v59  ;;  %v871_v59 = vadd.f32 %v3037_v39, %v846_v10  ;;  %v885_v60 = vmax.f32 %v869_v47, %v877_v51 }
 0x10f   : > { %v2572_v3 = vpop.eup %2571  ;;  %v892_v4 = vsub.f32 0.0, %v884_v63  ;;  %v2269_v5 = vpack.c.bf16 %v2471_v0, %v2470_v1 }
 0x110   : > { %v1079_v7 = vpop.permute.xlu1 %1078  ;;  %v464_v8 = vmul.f32 %v2572_v3, %v3048_v52  ;;  %v879_v0 = vmul.f32 0.2, %v871_v59 }
 0x111   : > { %v900_v55 = vmul.f32 1.442695, %v892_v4  ;;  %v1113_v9 = vadd.f32 %v3046_v61, %v1079_v7  ;;  %2270 = vmatprep.subr.bf16.mxu0 %v2269_v5  ;;  %v1099_v56 = vpop.permute.xlu0 %1098 }
 0x112   : > { %2066 = vmatprep.mubr.f32.mxu0 %v464_v8  ;;  %2272 = vmatpush3.bf16.msra.mxu0 %v2269_v5  ;;  %v893_v5 = vsub.f32 0.0, %v885_v60  ;;  %v1118_v23 = vadd.f32 %v3046_v61, %v1099_v56 }
 0x113   : > { %2577 = vpow2.f32 %v900_v55  ;;  %v1121_v11 = vmul.f32 0.2, %v1113_v9  ;;  %2067 = vmatmul.mubr.f32.gmra.mrb[6].mxu0 %v465_v6 }
 0x114   : > { %v2574_v12 = vpop.eup %2573  ;;  %v2475_v13 = vpop.permute.xlu1 %2474 }
 0x115   : > { %v1129_v14 = vmax.f32 %v1113_v9, %v1121_v11  ;;  %v2477_v15 = vunpack.i.h.bf16 %v2475_v13  ;;  %v2476_v16 = vunpack.i.l.bf16 %v2475_v13  ;;  %v661_v17 = vmul.f32 %v2574_v12, %v3048_v52  ;;  %v1107_v6 = vpop.permute.xlu0 %1106 }
 0x116   : > { %v1116_v9 = vadd.f32 %v3046_v61, %v1091_v48  ;;  %v887_v11 = vmax.f32 %v871_v59, %v879_v0  ;;  %v881_v12 = vmul.f32 0.2, %v873_v62 }
 0x117   : > { %v1137_v18 = vsub.f32 0.0, %v1129_v14  ;;  %v2301_v19 = vpack.c.bf16 %v2477_v15, %v2476_v16  ;;  %2110 = vmatprep.mubr.f32.mxu1 %v661_v17  ;;  %v902_v14 = vmul.f32 1.442695, %v893_v5 }
 0x118   : > { %v2576_v20 = vpop.eup %2575  ;;  %v842_v22 = vpop.permute.xlu1 %841 }
 0x119   : > { %v1145_v26 = vmul.f32 1.442695, %v1137_v18  ;;  %2302 = vmatprep.subr.bf16.mxu1 %v2301_v19  ;;  %v662_v58 = vmul.f32 %v2576_v20, %v3050_v2  ;;  %v870_v4 = vadd.f32 %v3037_v39, %v842_v22  ;;  %v2522_v16 = vpop.permute.xlu0 %2521  ;;  %v3068_v18 = vadd.f32 %v3037_v39, %v862_v33 }
 0x11a   : > { %2304 = vmatpush3.bf16.msra.mxu1 %v2301_v19  ;;  %v1124_v22 = vmul.f32 0.2, %v1116_v9 }
 0x11b   : > { %2579 = vpow2.f32 %v1145_v26  ;;  %2111 = vmatmul.mubr.f32.gmra.mrb[6].mxu1 %v662_v58  ;;  %v878_v13 = vmul.f32 0.2, %v870_v4  ;;  %v895_v58 = vsub.f32 0.0, %v887_v11  ;;  %v3074_v33 = vmul.f32 0.2, %v3068_v18 }
 0x11c   : > { %v2481_v28 = vpop.permute.xlu1 %2480  ;;  %2581 = vpow2.f32 %v902_v14 }
 0x11d   : > { %v2578_v29 = vpop.eup %2577  ;;  %v2483_v30 = vunpack.i.h.bf16 %v2481_v28  ;;  %v2482_v31 = vunpack.i.l.bf16 %v2481_v28  ;;  %v889_v28 = vmax.f32 %v873_v62, %v881_v12  ;;  %v906_v47 = vmul.f32 1.442695, %v895_v58 }
 0x11e   : > { %v916_v32 = vmul.f32 %v2578_v29, %v2993_v37  ;;  %v891_v56 = vmax.f32 %v3068_v18, %v3074_v33 }
 0x11f   : > { %v2273_v34 = vpack.c.bf16 %v2483_v30, %v2482_v31  ;;  %v886_v31 = vmax.f32 %v870_v4, %v878_v13  ;;  %v897_v48 = vsub.f32 0.0, %v889_v28 }
 0x120   : > { %v1087_v35 = vpop.permute.xlu1 %1086  ;;  %2145 = vmatprep.mubr.f32.mxu0 %v916_v32 }
 0x121   : > { %2274 = vmatprep.subr.bf16.mxu0 %v2273_v34  ;;  %v1115_v7 = vadd.f32 %v3046_v61, %v1087_v35 }
 0x122   : > { %2276 = vmatpush3.bf16.msra.mxu0 %v2273_v34 }
 0x123   : > { %v1123_v17 = vmul.f32 0.2, %v1115_v7 }
 0x124   : > { %v2487_v36 = vpop.permute.xlu1 %2486 }
 0x125   : > { %v2580_v41 = vpop.eup %2579  ;;  %v2489_v24 = vunpack.i.h.bf16 %v2487_v36  ;;  %v2488_v43 = vunpack.i.l.bf16 %v2487_v36  ;;  %v1131_v35 = vmax.f32 %v1115_v7, %v1123_v17 }
 0x126   : > { %v1161_v44 = vmul.f32 %v2580_v41, %v2993_v37  ;;  %v1114_v37 = vadd.f32 %v3046_v61, %v1083_v40  ;;  %v3083_v14 = vpop.eup %2581 }
 0x127   : > { %v2305_v45 = vpack.c.bf16 %v2489_v24, %v2488_v43  ;;  %v1132_v24 = vmax.f32 %v1116_v9, %v1124_v22  ;;  %v1126_v43 = vmul.f32 0.2, %v1118_v23 }
 0x128   : > { %v850_v46 = vpop.permute.xlu1 %849  ;;  %2189 = vmatprep.mubr.f32.mxu1 %v1161_v44  ;;  %v1122_v55 = vmul.f32 0.2, %v1114_v37  ;;  %v3077_v44 = vadd.f32 %v3046_v61, %v1107_v6 }
 0x129   : > { %2306 = vmatprep.subr.bf16.mxu1 %v2305_v45  ;;  %v872_v15 = vadd.f32 %v3037_v39, %v850_v46  ;;  %v2532_v46 = vpop.permute.xlu0 %2531  ;;  %v1134_v0 = vmax.f32 %v1118_v23, %v1126_v43 }
 0x12a   : > { %2308 = vmatpush3.bf16.msra.mxu1 %v2305_v45  ;;  %v1130_v20 = vmax.f32 %v1114_v37, %v1122_v55  ;;  %v1128_v62 = vmul.f32 0.2, %v3077_v44  ;;  %v2534_v4 = vunpack.i.h.bf16 %v2532_v46  ;;  %v2533_v5 = vunpack.i.l.bf16 %v2532_v46 }
 0x12b   : > { %v880_v32 = vmul.f32 0.2, %v872_v15 }
 0x12c   : > { %v2493_v57 = vpop.permute.xlu1 %2492  ;;  %v1138_v41 = vsub.f32 0.0, %v1130_v20  ;;  %v1136_v17 = vmax.f32 %v3077_v44, %v1128_v62  ;;  %v2321_v22 = vpack.c.bf16 %v2534_v4, %v2533_v5 }
 0x12d   : > { %v2495_v49 = vunpack.i.h.bf16 %v2493_v57  ;;  %v2494_v50 = vunpack.i.l.bf16 %v2493_v57  ;;  %v2542_v9 = vpop.permute.xlu0 %2541 }
 0x12e   : > { %v1147_v37 = vmul.f32 1.442695, %v1138_v41  ;;  %v2544_v23 = vunpack.i.h.bf16 %v2542_v9  ;;  %v2543_v28 = vunpack.i.l.bf16 %v2542_v9 }
 0x12f   : > { %v2277_v53 = vpack.c.bf16 %v2495_v49, %v2494_v50  ;;  %v894_v49 = vsub.f32 0.0, %v886_v31  ;;  %v888_v50 = vmax.f32 %v872_v15, %v880_v32  ;;  %v910_v32 = vmul.f32 1.442695, %v897_v48 }
 0x130   : > { %v1095_v54 = vpop.permute.xlu1 %1094  ;;  %2583 = vpow2.f32 %v1147_v37 }
 0x131   : > { %2278 = vmatprep.subr.bf16.mxu0 %v2277_v53  ;;  %v1117_v19 = vadd.f32 %v3046_v61, %v1095_v54  ;;  %v1139_v54 = vsub.f32 0.0, %v1131_v35  ;;  %v904_v6 = vmul.f32 1.442695, %v894_v49  ;;  %v896_v7 = vsub.f32 0.0, %v888_v50 }
 0x132   : > { %2280 = vmatpush3.bf16.msra.mxu0 %v2277_v53  ;;  %v2523_v53 = vunpack.i.l.bf16 %v2522_v16 }
 0x133   : > { %v1125_v36 = vmul.f32 0.2, %v1117_v19  ;;  %2585 = vpow2.f32 %v904_v6 }
 0x134   : > { %v2499_v63 = vpop.permute.xlu1 %2498 }
 0x135   : > { %v2501_v1 = vunpack.i.h.bf16 %v2499_v63  ;;  %v2500_v3 = vunpack.i.l.bf16 %v2499_v63  ;;  %v1133_v59 = vmax.f32 %v1117_v19, %v1125_v36  ;;  %v1140_v63 = vsub.f32 0.0, %v1132_v24 }
 0x136   : > { %v1144_v24 = vsub.f32 0.0, %v1136_v17 }
 0x137   : > { %v2309_v8 = vpack.c.bf16 %v2501_v1, %v2500_v3  ;;  %v1141_v11 = vsub.f32 0.0, %v1133_v59  ;;  %v1151_v15 = vmul.f32 1.442695, %v1140_v63  ;;  %v917_v59 = vmul.f32 %v3083_v14, %v3003_v27 }
 0x138   : > { %v858_v10 = vpop.permute.xlu1 %857  ;;  %v1159_v49 = vmul.f32 1.442695, %v1144_v24 }
 0x139   : > { %2310 = vmatprep.subr.bf16.mxu1 %v2309_v8  ;;  %v874_v34 = vadd.f32 %v3037_v39, %v858_v10  ;;  %v2524_v39 = vunpack.i.h.bf16 %v2522_v16  ;;  %v1149_v10 = vmul.f32 1.442695, %v1139_v54  ;;  %v1142_v16 = vsub.f32 0.0, %v1134_v0 }
 0x13a   : > { %2312 = vmatpush3.bf16.msra.mxu1 %v2309_v8 }
 0x13b   : > { %v882_v51 = vmul.f32 0.2, %v874_v34  ;;  %v2317_v55 = vpack.c.bf16 %v2524_v39, %v2523_v53  ;;  %2587 = vpow2.f32 %v1149_v10  ;;  %v1155_v33 = vmul.f32 1.442695, %v1142_v16  ;;  %v2584_v39 = vpop.eup %2583 }
 0x13c   : > { %v2506_v26 = vpop.permute.xlu1 %2505  ;;  %2589 = vpow2.f32 %v906_v47 }
 0x13d   : > { %v2508_v29 = vunpack.i.h.bf16 %v2506_v26  ;;  %v2507_v30 = vunpack.i.l.bf16 %v2506_v26  ;;  %v890_v8 = vmax.f32 %v874_v34, %v882_v51  ;;  %v908_v26 = vmul.f32 1.442695, %v896_v7  ;;  %v2586_v51 = vpop.eup %2585 }
 0x13e   : > { %v899_v34 = vsub.f32 0.0, %v891_v56  ;;  %2591 = vpow2.f32 %v1151_v15  ;;  %v918_v63 = vmul.f32 %v2586_v51, %v3008_v38 }
 0x13f   : > { %v2281_v40 = vpack.c.bf16 %v2508_v29, %v2507_v30  ;;  %v898_v58 = vsub.f32 0.0, %v890_v8  ;;  %v1153_v29 = vmul.f32 1.442695, %v1141_v11  ;;  %2593 = vpow2.f32 %v908_v26 }
 0x140   : > { %v1103_v45 = vpop.permute.xlu1 %1102  ;;  %v914_v47 = vmul.f32 1.442695, %v899_v34 }
 0x141   : > { %v1119_v57 = vadd.f32 %v3046_v61, %v1103_v45  ;;  %2282 = vmatprep.subr.bf16.mxu0 %v2281_v40  ;;  %v912_v41 = vmul.f32 1.442695, %v898_v58  ;;  %2595 = vpow2.f32 %v1153_v29  ;;  %v2325_v45 = vpack.c.bf16 %v2544_v23, %v2543_v28 }
 0x142   : > { %2284 = vmatpush3.bf16.msra.mxu0 %v2281_v40  ;;  %2597 = vpow2.f32 %v910_v32 }
 0x143   : > { %v1127_v60 = vmul.f32 0.2, %v1119_v57  ;;  %2599 = vpow2.f32 %v1155_v33 }
 0x144   : > { %v2512_v1 = vpop.permute.xlu1 %2511  ;;  %2601 = vpow2.f32 %v912_v41 }
 0x145   : > { %v2514_v61 = vunpack.i.h.bf16 %v2512_v1  ;;  %v2513_v3 = vunpack.i.l.bf16 %v2512_v1  ;;  %v1135_v12 = vmax.f32 %v1119_v57, %v1127_v60  ;;  %v2588_v53 = vpop.eup %2587  ;;  %v1162_v60 = vmul.f32 %v2584_v39, %v3003_v27 }
 0x146   : > { %v2590_v54 = vpop.eup %2589  ;;  %v1163_v0 = vmul.f32 %v2588_v53, %v3008_v38 }
 0x147   : > { %v2313_v13 = vpack.c.bf16 %v2514_v61, %v2513_v3  ;;  %v1143_v30 = vsub.f32 0.0, %v1135_v12  ;;  %v919_v3 = vmul.f32 %v2590_v54, %v3011_v42 }
 0x148   : > { %v2517_v18 = vpop.permute.xlu1 %2516  ;;  %v2592_v56 = vpop.eup %2591 }
 0x149   : > { %v2519_v19 = vunpack.i.h.bf16 %v2517_v18  ;;  %v2518_v20 = vunpack.i.l.bf16 %v2517_v18  ;;  %2314 = vmatprep.subr.bf16.mxu1 %v2313_v13  ;;  %v1157_v43 = vmul.f32 1.442695, %v1143_v30  ;;  %v2594_v37 = vpop.eup %2593  ;;  %v1164_v4 = vmul.f32 %v2592_v56, %v3011_v42 }
 0x14a   : > { %2316 = vmatpush3.bf16.msra.mxu1 %v2313_v13  ;;  %v920_v6 = vmul.f32 %v2594_v37, %v3027_v21 }
 0x14b   : > { %v2285_v31 = vpack.c.bf16 %v2519_v19, %v2518_v20  ;;  %2318 = vmatprep.subr.bf16.mxu1 %v2317_v55  ;;  %2603 = vpow2.f32 %v1157_v43  ;;  %v2596_v62 = vpop.eup %2595 }
 0x14c   : > { %v2527_v35 = vpop.permute.xlu1 %2526  ;;  %2605 = vpow2.f32 %v914_v47  ;;  %v2598_v1 = vpop.eup %2597  ;;  %v1165_v27 = vmul.f32 %v2596_v62, %v3027_v21  ;;  %v1322_v62 = vld [vmem:[#allocation2] sm:$0xff] }
 0x14d   : > { %v2529_v36 = vunpack.i.h.bf16 %v2527_v35  ;;  %v2528_v40 = vunpack.i.l.bf16 %v2527_v35  ;;  %2286 = vmatprep.subr.bf16.mxu0 %v2285_v31  ;;  %2607 = vpow2.f32 %v1159_v49  ;;  %v2600_v61 = vpop.eup %2599  ;;  %v921_v8 = vmul.f32 %v2598_v1, %v3029_v25 }
 0x14e   : > { %2288 = vmatpush3.bf16.msra.mxu0 %v2285_v31  ;;  %2320 = vmatpush3.bf16.msra.mxu1 %v2317_v55  ;;  %v2602_v5 = vpop.eup %2601  ;;  %v1166_v55 = vmul.f32 %v2600_v61, %v3029_v25 }
 0x14f   : > { %v2289_v44 = vpack.c.bf16 %v2529_v36, %v2528_v40  ;;  %2322 = vmatprep.subr.bf16.mxu1 %v2321_v22  ;;  %v922_v10 = vmul.f32 %v2602_v5, %v3048_v52 }
 0x150   : > { %v2537_v46 = vpop.permute.xlu1 %2536 }
 0x151   : > { %v2539_v48 = vunpack.i.h.bf16 %v2537_v46  ;;  %v2538_v57 = vunpack.i.l.bf16 %v2537_v46  ;;  %2290 = vmatprep.subr.bf16.mxu0 %v2289_v44 }
 0x152   : > { %2292 = vmatpush3.bf16.msra.mxu0 %v2289_v44  ;;  %2324 = vmatpush3.bf16.msra.mxu1 %v2321_v22 }
 0x153   : > { %v2293_v50 = vpack.c.bf16 %v2539_v48, %v2538_v57  ;;  %2326 = vmatprep.subr.bf16.mxu1 %v2325_v45 }
 0x155   : > { %2294 = vmatprep.subr.bf16.mxu0 %v2293_v50  ;;  %v2604_v7 = vpop.eup %2603 }
 0x156   : > { %2296 = vmatpush3.bf16.msra.mxu0 %v2293_v50  ;;  %2328 = vmatpush3.bf16.msra.mxu1 %v2325_v45  ;;  %v2606_v38 = vpop.eup %2605  ;;  %v1167_v42 = vmul.f32 %v2604_v7, %v3048_v52 }
 0x157   : > { %v2608_v9 = vpop.eup %2607  ;;  %v923_v21 = vmul.f32 %v2606_v38, %v3050_v2 }
 0x158   : > { %v1168_v11 = vmul.f32 %v2608_v9, %v3050_v2 }
 0x159   : > { %2146 = vmatmul.mubr.f32.vlgmr.msra.gmra.mrb[8].mxu0 %v917_v59  ;;  %2190 = vmatmul.mubr.f32.vlgmr.msra.gmra.mrb[8].mxu1 %v1162_v60  ;;  %v1323_v60 = vld [vmem:[#allocation2 + $0x8] sm:$0xff] }
 0x15a   : > { %2148 = vmatprep.mubr.f32.mxu0 %v918_v63  ;;  %2192 = vmatprep.mubr.f32.mxu1 %v1163_v0 }
 0x15d   : > { %2149 = vmatmul.mubr.f32.gmra.mrb[10].mxu0 %v919_v3  ;;  %2193 = vmatmul.mubr.f32.gmra.mrb[10].mxu1 %v1164_v4 }
 0x15e   : > { %2151 = vmatprep.mubr.f32.mxu0 %v920_v6  ;;  %2195 = vmatprep.mubr.f32.mxu1 %v1165_v27 }
 0x161   : > { %2152 = vmatmul.mubr.f32.gmra.mrb[12].mxu0 %v921_v8  ;;  %2196 = vmatmul.mubr.f32.gmra.mrb[12].mxu1 %v1166_v55  ;;  %v1325_v8 = vld [vmem:[#allocation2 + $0x18] sm:$0xff] }
 0x162   : > { %2154 = vmatprep.mubr.f32.mxu0 %v922_v10  ;;  %2198 = vmatprep.mubr.f32.mxu1 %v1167_v42  ;;  %v1324_v42 = vld [vmem:[#allocation2 + $0x10] sm:$0xff] }
 0x165   : > { %2155 = vmatmul.mubr.f32.gmra.mrb[14].mxu0 %v923_v21  ;;  %2199 = vmatmul.mubr.f32.gmra.mrb[14].mxu1 %v1168_v11 }
 0x1c6   : > { %v3101_v12 = vpop.f32.mrb[0].mxu0 }
 0x1c7   : > { %v3103_v13 = vpop.f32.mrb[1].mxu0 }
 0x1c8   : > { %v2103_v25 = vpop.f32.mrb[0].mxu1 }
 0x1c9   : > { %1340 = vrot.lane.b32.xlu0 %v2103_v25, %s2712_s22  ;;  %v793_v14 = vpop.f32.mrb[1].mxu1 }
 0x1ca   : > { %v3105_v15 = vpop.f32.mrb[2].mxu0  ;;  %1338 = vrot.lane.b32.xlu1 %v793_v14, %s2712_s22 }
 0x1cb   : > { %v3107_v52 = vpop.f32.mrb[3].mxu0 }
 0x1d0   : > { %v2106_v16 = vpop.f32.mrb[2].mxu1 }
 0x1d1   : > { %1344 = vrot.lane.b32.xlu0 %v2106_v16, %s2712_s22  ;;  %v803_v17 = vpop.f32.mrb[3].mxu1 }
 0x1d2   : > { %1342 = vrot.lane.b32.xlu1 %v803_v17, %s2712_s22  ;;  %v1327_v17 = vld [vmem:[#allocation2 + $0x28] sm:$0xff] }
 0x1d8   : > { %v3109_v2 = vpop.f32.mrb[4].mxu0 }
 0x1d9   : > { %v3111_v18 = vpop.f32.mrb[5].mxu0 }
 0x1e0   : > { %v2109_v19 = vpop.f32.mrb[4].mxu1 }
 0x1e1   : > { %1348 = vrot.lane.b32.xlu0 %v2109_v19, %s2712_s22  ;;  %v813_v20 = vpop.f32.mrb[5].mxu1 }
 0x1e2   : > { %1346 = vrot.lane.b32.xlu1 %v813_v20, %s2712_s22 }
 0x1e6   : > { %v3113_v22 = vpop.f32.mrb[6].mxu0 }
 0x1e7   : > { %v3115_v23 = vpop.f32.mrb[7].mxu0 }
 0x1ee   : > { %v2112_v26 = vpop.f32.mrb[6].mxu1 }
 0x1ef   : > { %1352 = vrot.lane.b32.xlu0 %v2112_v26, %s2712_s22  ;;  %v823_v58 = vpop.f32.mrb[7].mxu1 }
 0x1f0   : > { %1350 = vrot.lane.b32.xlu1 %v823_v58, %s2712_s22  ;;  %v1326_v58 = vld [vmem:[#allocation2 + $0x20] sm:$0xff] }
 0x22c   : > { %v2147_v28 = vpop.f32.mrb[8].mxu0  ;;  %v2191_v29 = vpop.f32.mrb[8].mxu1 }
 0x22d   : > { %v1283_v30 = vpop.f32.mrb[9].mxu1  ;;  %1372 = vrot.lane.b32.xlu0 %v2147_v28, %s2713_s11  ;;  %v1038_v31 = vpop.f32.mrb[9].mxu0 }
 0x22e   : > { %1370 = vrot.lane.b32.xlu1 %v1038_v31, %s2713_s11 }
 0x230   : > { %v2150_v32 = vpop.f32.mrb[10].mxu0  ;;  %v2194_v34 = vpop.f32.mrb[10].mxu1 }
 0x231   : > { %v1293_v35 = vpop.f32.mrb[11].mxu1  ;;  %1404 = vrot.lane.b32.xlu0 %v2191_v29, %s2714_s14  ;;  %v1048_v33 = vpop.f32.mrb[11].mxu0 }
 0x232   : > { %1402 = vrot.lane.b32.xlu1 %v1283_v30, %s2714_s14 }
 0x234   : > { %v2153_v36 = vpop.f32.mrb[12].mxu0  ;;  %v2197_v40 = vpop.f32.mrb[12].mxu1 }
 0x235   : > { %v1303_v41 = vpop.f32.mrb[13].mxu1  ;;  %1376 = vrot.lane.b32.xlu0 %v2150_v32, %s2713_s11  ;;  %v1058_v24 = vpop.f32.mrb[13].mxu0 }
 0x236   : > { %1374 = vrot.lane.b32.xlu1 %v1048_v33, %s2713_s11  ;;  %v1329_v33 = vld [vmem:[#allocation2 + $0x38] sm:$0xff] }
 0x238   : > { %v2156_v43 = vpop.f32.mrb[14].mxu0  ;;  %v2200_v44 = vpop.f32.mrb[14].mxu1 }
 0x239   : > { %v1313_v45 = vpop.f32.mrb[15].mxu1  ;;  %1408 = vrot.lane.b32.xlu0 %v2194_v34, %s2714_s14  ;;  %v1068_v46 = vpop.f32.mrb[15].mxu0 }
 0x23a   : > { %1406 = vrot.lane.b32.xlu1 %v1293_v35, %s2714_s14 }
 0x23b   : > { %v1341_v47 = vpop.permute.xlu0 %1340 }
 0x23c   : > { %v1339_v48 = vpop.permute.xlu1 %1338  ;;  %v1428_v59 = vsel %vm1426_vm1, %v3101_v12, %v1341_v47 }
 0x23d   : > { %1380 = vrot.lane.b32.xlu0 %v2153_v36, %s2713_s11  ;;  %v1427_v37 = vsel %vm1426_vm1, %v3103_v13, %v1339_v48 }
 0x23e   : > { %1378 = vrot.lane.b32.xlu1 %v1058_v24, %s2713_s11  ;;  %v1328_v24 = vld [vmem:[#allocation2 + $0x30] sm:$0xff] }
 0x241   : > { %1412 = vrot.lane.b32.xlu0 %v2197_v40, %s2714_s14 }
 0x242   : > { %1410 = vrot.lane.b32.xlu1 %v1303_v41, %s2714_s14 }
 0x243   : > { %v1345_v57 = vpop.permute.xlu0 %1344 }
 0x244   : > { %v1343_v39 = vpop.permute.xlu1 %1342  ;;  %v1430_v38 = vsel %vm1426_vm1, %v3105_v15, %v1345_v57 }
 0x245   : > { %1384 = vrot.lane.b32.xlu0 %v2156_v43, %s2713_s11  ;;  %v1429_v55 = vsel %vm1426_vm1, %v3107_v52, %v1343_v39 }
 0x246   : > { %1382 = vrot.lane.b32.xlu1 %v1068_v46, %s2713_s11 }
 0x249   : > { %1416 = vrot.lane.b32.xlu0 %v2200_v44, %s2714_s14 }
 0x24a   : > { %1414 = vrot.lane.b32.xlu1 %v1313_v45, %s2714_s14 }
 0x253   : > { %v1349_v49 = vpop.permute.xlu0 %1348 }
 0x254   : > { %v1347_v50 = vpop.permute.xlu1 %1346  ;;  %v1432_v52 = vsel %vm1426_vm1, %v3109_v2, %v1349_v49 }
 0x255   : > { %v1431_v19 = vsel %vm1426_vm1, %v3111_v18, %v1347_v50 }
 0x261   : > { %v1353_v51 = vpop.permute.xlu0 %1352 }
 0x262   : > { %v1351_v53 = vpop.permute.xlu1 %1350  ;;  %v1434_v18 = vsel %vm1426_vm1, %v3113_v22, %v1353_v51 }
 0x263   : > { %v1433_v36 = vsel %vm1426_vm1, %v3115_v23, %v1351_v53 }
 0x29f   : > { %v1373_v54 = vpop.permute.xlu0 %1372 }
 0x2a0   : > { %v1371_v56 = vpop.permute.xlu1 %1370  ;;  %v1437_v63 = vsel %vm1435_vm2, %v1428_v59, %v1373_v54 }
 0x2a1   : > { %v1436_v1 = vsel %vm1435_vm2, %v1427_v37, %v1371_v56 }
 0x2a3   : > { %v1405_v0 = vpop.permute.xlu0 %1404 }
 0x2a4   : > { %v1446_v61 = vsel %vm1444_vm3, %v1437_v63, %v1405_v0  ;;  %v1403_v3 = vpop.permute.xlu1 %1402 }
 0x2a5   : > { %v1454_v4 = vadd.f32 %v1446_v61, %v1323_v60  ;;  %v1445_v5 = vsel %vm1444_vm3, %v1436_v1, %v1403_v3 }
 0x2a6   : > { %v1453_v6 = vadd.f32 %v1445_v5, %v1322_v62 }
 0x2a7   : > { %1463 = vst.msk [vmem:[#allocation2 + $0x8] sm:$0xff] %vm1461_vm4, %v1454_v4  ;;  %v1377_v27 = vpop.permute.xlu0 %1376 }
 0x2a8   : > { %1462 = vst.msk [vmem:[#allocation2] sm:$0xff] %vm1461_vm4, %v1453_v6  ;;  %v1375_v7 = vpop.permute.xlu1 %1374  ;;  %v1439_v9 = vsel %vm1435_vm2, %v1430_v38, %v1377_v27 }
 0x2a9   : > { %v1438_v21 = vsel %vm1435_vm2, %v1429_v55, %v1375_v7 }
 0x2ab   : > { %v1409_v10 = vpop.permute.xlu0 %1408 }
 0x2ac   : > { %v1448_v11 = vsel %vm1444_vm3, %v1439_v9, %v1409_v10  ;;  %v1407_v12 = vpop.permute.xlu1 %1406 }
 0x2ad   : > { %v1456_v13 = vadd.f32 %v1448_v11, %v1325_v8  ;;  %v1447_v25 = vsel %vm1444_vm3, %v1438_v21, %v1407_v12 }
 0x2ae   : > { %v1455_v14 = vadd.f32 %v1447_v25, %v1324_v42 }
 0x2af   : > { %1465 = vst.msk [vmem:[#allocation2 + $0x18] sm:$0xff] %vm1461_vm4, %v1456_v13  ;;  %v1381_v15 = vpop.permute.xlu0 %1380 }
 0x2b0   : > { %1464 = vst.msk [vmem:[#allocation2 + $0x10] sm:$0xff] %vm1461_vm4, %v1455_v14  ;;  %v1379_v16 = vpop.permute.xlu1 %1378  ;;  %v1441_v20 = vsel %vm1435_vm2, %v1432_v52, %v1381_v15 }
 0x2b1   : > { %v1440_v28 = vsel %vm1435_vm2, %v1431_v19, %v1379_v16 }
 0x2b3   : > { %v1413_v26 = vpop.permute.xlu0 %1412 }
 0x2b4   : > { %v1450_v29 = vsel %vm1444_vm3, %v1441_v20, %v1413_v26  ;;  %v1411_v30 = vpop.permute.xlu1 %1410 }
 0x2b5   : > { %v1458_v31 = vadd.f32 %v1450_v29, %v1327_v17  ;;  %v1449_v32 = vsel %vm1444_vm3, %v1440_v28, %v1411_v30 }
 0x2b6   : > { %v1457_v34 = vadd.f32 %v1449_v32, %v1326_v58 }
 0x2b7   : > { %1467 = vst.msk [vmem:[#allocation2 + $0x28] sm:$0xff] %vm1461_vm4, %v1458_v31  ;;  %v1385_v2 = vpop.permute.xlu0 %1384 }
 0x2b8   : > { %1466 = vst.msk [vmem:[#allocation2 + $0x20] sm:$0xff] %vm1461_vm4, %v1457_v34  ;;  %v1383_v35 = vpop.permute.xlu1 %1382  ;;  %v1443_v40 = vsel %vm1435_vm2, %v1434_v18, %v1385_v2 }
 0x2b9   : > { %v1442_v43 = vsel %vm1435_vm2, %v1433_v36, %v1383_v35 }
 0x2bb   : > { %v1417_v41 = vpop.permute.xlu0 %1416 }
 0x2bc   : > { %v1452_v44 = vsel %vm1444_vm3, %v1443_v40, %v1417_v41  ;;  %v1415_v45 = vpop.permute.xlu1 %1414 }
 0x2bd   : > { %v1460_v46 = vadd.f32 %v1452_v44, %v1329_v33  ;;  %v1451_v47 = vsel %vm1444_vm3, %v1442_v43, %v1415_v45 }
 0x2be   : > { %v1459_v48 = vadd.f32 %v1451_v47, %v1328_v24 }
 0x2bf   : > { %1469 = vst.msk [vmem:[#allocation2 + $0x38] sm:$0xff] %vm1461_vm4, %v1460_v46 }
 0x2c0   : > { %1468 = vst.msk [vmem:[#allocation2 + $0x30] sm:$0xff] %vm1461_vm4, %v1459_v48 }
 0x2c1 PF: > { %p1926_p5 = scmp.ne.s32.totalorder %s2685_s25, 2 }
 0x2c2   : > { %v3158_v22 = vld [vmem:[#allocation2 + $0x10] sm:$0xff] (!%p1926_p5)  ;;  %v3160_v23 = vld [vmem:[#allocation2] sm:$0xff] (!%p1926_p5)  ;;  %v3162_v57 = vld [vmem:[#allocation2 + $0x18] sm:$0xff] (!%p1926_p5)  ;;  %v2715_v39 = vmov (!%p1926_p5), 8   ;;  %v2716_v8 = vmov (!%p1926_p5), 17   ;;  %v2717_v55 = vmov (!%p1926_p5), 26  }
 0x2c3   : > { %1473 = sbr.rel (%p1926_p5) target bundleno = 1033 (0x409), region = 86  ;;  %2610 = vset.pattern.permute.xlu1 (!%p1926_p5), %v2715_v39  ;;  %2609 = vset.pattern.permute.xlu0 (!%p1926_p5), %v2715_v39  ;;  %2617 = vrcp.f32 (!%p1926_p5), %v3158_v22  ;;  %v3165_v49 = vld [vmem:[#allocation2 + $0x8] sm:$0xff] (!%p1926_p5)  ;;  %v3171_v51 = vld [vmem:[#allocation2 + $0x20] sm:$0xff] (!%p1926_p5)  ;;  %vm1484_vm5 = vcmp.gt.f32.partialorder (!%p1926_p5), %v3158_v22, 0.0  ;;  %vm1482_vm6 = vcmp.gt.f32.partialorder (!%p1926_p5), %v3160_v23, 0.0  ;;  %vm1485_vm7 = vcmp.gt.f32.partialorder (!%p1926_p5), %v3162_v57, 0.0 }
 0x2c4   : > { %2619 = vrcp.f32 (!%p1926_p5), %v3160_v23  ;;  %v3168_v50 = vld [vmem:[#allocation2 + $0x28] sm:$0xff] (!%p1926_p5)  ;;  %vm1483_vm8 = vcmp.gt.f32.partialorder (!%p1926_p5), %v3165_v49, 0.0  ;;  %vm1486_vm10 = vcmp.gt.f32.partialorder (!%p1926_p5), %v3171_v51, 0.0  ;;  %v2718_v9 = vmov (!%p1926_p5), 35   ;;  %s2719_s25 = smov (!%p1926_p5), 127   ;;  %s2720_s15 = smov (!%p1926_p5), 126  }
 0x2c5   : > { %2621 = vrcp.f32 (!%p1926_p5), %v3162_v57  ;;  %vm1487_vm9 = vcmp.gt.f32.partialorder (!%p1926_p5), %v3168_v50, 0.0  ;;  %s2721_s23 = smov (!%p1926_p5), 125   ;;  %vm1770_vm13 = vcmask (!%p1926_p5), 64512   ;;  %vm1779_vm14 = vcmask (!%p1926_p5), 130048  }
 0x2c6   : > { %2623 = vrcp.f32 (!%p1926_p5), %v3165_v49  ;;  %v3176_v53 = vld [vmem:[#allocation2 + $0x38] sm:$0xff] (!%p1926_p5)  ;;  %vm1788_vm15 = vcmask (!%p1926_p5), 195584   ;;  %vm1797_vm0 = vcmask (!%p1926_p5), 261120  }
 0x2c7   : > { %2625 = vrcp.f32 (!%p1926_p5), %v3168_v50  ;;  %v3178_v54 = vld [vmem:[#allocation2 + $0x30] sm:$0xff] (!%p1926_p5)  ;;  %vm1489_vm11 = vcmp.gt.f32.partialorder (!%p1926_p5), %v3176_v53, 0.0 }
 0x2c8   : > { %2627 = vrcp.f32 (!%p1926_p5), %v3171_v51  ;;  %vm1488_vm12 = vcmp.gt.f32.partialorder (!%p1926_p5), %v3178_v54, 0.0 }
 0x2c9   : > { %2629 = vrcp.f32 (!%p1926_p5), %v3176_v53 }
 0x2ca   : > { %2631 = vrcp.f32 %v3178_v54 }
 0x2cd   : > { %v2618_v56 = vpop.eup %2617 }
 0x2ce   : > { %v2620_v59 = vpop.eup %2619  ;;  %v1500_v60 = vsel %vm1484_vm5, %v2618_v56, 0.0 }
 0x2cf   : > { %v2622_v37 = vpop.eup %2621  ;;  %1518 = vperm.xlu1 %2610, %v1500_v60   ;;  %v1498_v63 = vsel %vm1482_vm6, %v2620_v59, 0.0 }
 0x2d0   : > { %v2624_v0 = vpop.eup %2623  ;;  %1508 = vperm.xlu0 %2609, %v1498_v63   ;;  %v1501_v62 = vsel %vm1485_vm7, %v2622_v37, 0.0 }
 0x2d1   : > { %v2626_v1 = vpop.eup %2625  ;;  %v1499_v61 = vsel %vm1483_vm8, %v2624_v0, 0.0 }
 0x2d2   : > { %v2628_v3 = vpop.eup %2627  ;;  %v1503_v4 = vsel %vm1487_vm9, %v2626_v1, 0.0 }
 0x2d3   : > { %1523 = vperm.xlu1 %2610, %v1501_v62   ;;  %v2630_v5 = vpop.eup %2629  ;;  %v1502_v6 = vsel %vm1486_vm10, %v2628_v3, 0.0 }
 0x2d4   : > { %1513 = vperm.xlu0 %2609, %v1499_v61   ;;  %v2632_v27 = vpop.eup %2631  ;;  %v1505_v7 = vsel %vm1489_vm11, %v2630_v5, 0.0 }
 0x2d5   : > { %v1504_v38 = vsel %vm1488_vm12, %v2632_v27, 0.0 }
 0x2d7   : > { %1533 = vperm.xlu1 %2610, %v1503_v4  }
 0x2d8   : > { %1528 = vperm.xlu0 %2609, %v1502_v6  }
 0x2db   : > { %1543 = vperm.xlu1 %2610, %v1505_v7  }
 0x2dc   : > { %1538 = vperm.xlu0 %2609, %v1504_v38  }
 0x2df   : > { %2612 = vset.pattern.permute.xlu1 %v2716_v8 }
 0x2e0   : > { %2611 = vset.pattern.permute.xlu0 %v2716_v8  ;;  %1559 = vperm.xlu1 %2612, %v1499_v61  }
 0x2e1   : > { %1555 = vperm.xlu0 %2611, %v1498_v63  }
 0x2e4   : > { %1563 = vperm.xlu1 %2612, %v1500_v60  }
 0x2e5   : > { %1567 = vperm.xlu0 %2611, %v1501_v62  }
 0x2e8   : > { %1571 = vperm.xlu1 %2612, %v1502_v6  }
 0x2e9   : > { %1575 = vperm.xlu0 %2611, %v1503_v4  }
 0x2ec   : > { %1579 = vperm.xlu1 %2612, %v1504_v38  }
 0x2ed   : > { %1583 = vperm.xlu0 %2611, %v1505_v7  }
 0x2f0   : > { %2613 = vset.pattern.permute.xlu1 %v2717_v55 }
 0x2f1   : > { %2614 = vset.pattern.permute.xlu0 %v2717_v55  ;;  %1595 = vperm.xlu1 %2613, %v1498_v63  }
 0x2f2   : > { %1599 = vperm.xlu0 %2614, %v1499_v61  }
 0x2f5   : > { %1603 = vperm.xlu1 %2613, %v1500_v60  }
 0x2f6   : > { %1611 = vperm.xlu0 %2614, %v1502_v6  }
 0x2f9   : > { %1607 = vperm.xlu1 %2613, %v1501_v62  }
 0x2fa   : > { %1619 = vperm.xlu0 %2614, %v1504_v38  }
 0x2fd   : > { %1615 = vperm.xlu1 %2613, %v1503_v4  }
 0x2fe   : > { %2615 = vset.pattern.permute.xlu0 %v2718_v9 }
 0x2ff   : > { %1635 = vperm.xlu0 %2615, %v1498_v63  }
 0x301   : > { %1623 = vperm.xlu1 %2613, %v1505_v7  }
 0x303   : > { %1647 = vperm.xlu0 %2615, %v1501_v62  }
 0x305   : > { %2616 = vset.pattern.permute.xlu1 %v2718_v9 }
 0x306   : > { %1639 = vperm.xlu1 %2616, %v1499_v61  }
 0x307   : > { %1655 = vperm.xlu0 %2615, %v1503_v4  }
 0x30a   : > { %1643 = vperm.xlu1 %2616, %v1500_v60  }
 0x30b   : > { %1663 = vperm.xlu0 %2615, %v1505_v7  }
 0x30e   : > { %1651 = vperm.xlu1 %2616, %v1502_v6  }
 0x312   : > { %1659 = vperm.xlu1 %2616, %v1504_v38  }
 0x34e   : > { %v3190_v10 = vpop.permute.xlu1 %1518 }
 0x34f   : > { %v3192_v42 = vpop.permute.xlu0 %1508 }
 0x352   : > { %v3194_v21 = vpop.permute.xlu1 %1523 }
 0x353   : > { %v3196_v11 = vpop.permute.xlu0 %1513 }
 0x356   : > { %v3198_v12 = vpop.permute.xlu1 %1533 }
 0x357   : > { %v3200_v13 = vpop.permute.xlu0 %1528 }
 0x35a   : > { %v3202_v25 = vpop.permute.xlu1 %1543 }
 0x35b   : > { %v3204_v14 = vpop.permute.xlu0 %1538 }
 0x35f   : > { %v1560_v15 = vpop.permute.xlu1 %1559 }
 0x360   : > { %v1587_v16 = vmul.f32 %v1560_v15, %v3165_v49  ;;  %v1556_v52 = vpop.permute.xlu0 %1555 }
 0x361   : > { %v1586_v17 = vmul.f32 %v1556_v52, %v3160_v23 }
 0x362   : > { %1684 = vrot.lane.b32.xlu0 %v1587_v16, %s2719_s25 }
 0x363   : > { %1682 = vrot.lane.b32.xlu1 %v1586_v17, %s2719_s25  ;;  %v1564_v19 = vpop.permute.xlu1 %1563 }
 0x364   : > { %v1588_v20 = vmul.f32 %v1564_v19, %v3158_v22  ;;  %v1568_v26 = vpop.permute.xlu0 %1567 }
 0x365   : > { %v1589_v58 = vmul.f32 %v1568_v26, %v3162_v57 }
 0x367   : > { %1686 = vrot.lane.b32.xlu1 %v1588_v20, %s2719_s25  ;;  %1688 = vrot.lane.b32.xlu0 %v1589_v58, %s2719_s25  ;;  %v1572_v28 = vpop.permute.xlu1 %1571 }
 0x368   : > { %v1590_v29 = vmul.f32 %v1572_v28, %v3171_v51  ;;  %v1576_v30 = vpop.permute.xlu0 %1575 }
 0x369   : > { %v1591_v31 = vmul.f32 %v1576_v30, %v3168_v50 }
 0x36b   : > { %1690 = vrot.lane.b32.xlu1 %v1590_v29, %s2719_s25  ;;  %1692 = vrot.lane.b32.xlu0 %v1591_v31, %s2719_s25  ;;  %v1580_v32 = vpop.permute.xlu1 %1579 }
 0x36c   : > { %v1592_v34 = vmul.f32 %v1580_v32, %v3178_v54  ;;  %v1584_v2 = vpop.permute.xlu0 %1583 }
 0x36d   : > { %v1593_v35 = vmul.f32 %v1584_v2, %v3176_v53 }
 0x36f   : > { %1694 = vrot.lane.b32.xlu1 %v1592_v34, %s2719_s25  ;;  %1696 = vrot.lane.b32.xlu0 %v1593_v35, %s2719_s25  ;;  %v1546_v35 = vmul.f32 %v3192_v42, %v3160_v23 }
 0x370   : > { %v1596_v18 = vpop.permute.xlu1 %1595 }
 0x371   : > { %v1626_v33 = vmul.f32 %v1596_v18, %v3160_v23  ;;  %v1600_v36 = vpop.permute.xlu0 %1599 }
 0x372   : > { %v1627_v40 = vmul.f32 %v1600_v36, %v3165_v49 }
 0x373   : > { %1714 = vrot.lane.b32.xlu1 %v1626_v33, %s2720_s15 }
 0x374   : > { %1716 = vrot.lane.b32.xlu0 %v1627_v40, %s2720_s15  ;;  %v1604_v41 = vpop.permute.xlu1 %1603 }
 0x375   : > { %v1628_v24 = vmul.f32 %v1604_v41, %v3158_v22  ;;  %v1612_v43 = vpop.permute.xlu0 %1611 }
 0x376   : > { %v1630_v45 = vmul.f32 %v1612_v43, %v3171_v51 }
 0x377   : > { %1718 = vrot.lane.b32.xlu1 %v1628_v24, %s2720_s15  ;;  %v1547_v24 = vmul.f32 %v3196_v11, %v3165_v49 }
 0x378   : > { %v1608_v44 = vpop.permute.xlu1 %1607 }
 0x379   : > { %v1629_v46 = vmul.f32 %v1608_v44, %v3162_v57  ;;  %v1620_v47 = vpop.permute.xlu0 %1619  ;;  %v1548_v44 = vmul.f32 %v3190_v10, %v3158_v22 }
 0x37a   : > { %v1632_v39 = vmul.f32 %v1620_v47, %v3178_v54 }
 0x37b   : > { %1720 = vrot.lane.b32.xlu0 %v1629_v46, %s2720_s15  ;;  %1722 = vrot.lane.b32.xlu1 %v1630_v45, %s2720_s15  ;;  %v1549_v45 = vmul.f32 %v3194_v21, %v3162_v57 }
 0x37c   : > { %v1616_v48 = vpop.permute.xlu1 %1615 }
 0x37d   : > { %v1631_v56 = vmul.f32 %v1616_v48, %v3168_v50 }
 0x37e   : > { %v1636_v59 = vpop.permute.xlu0 %1635 }
 0x37f   : > { %v1666_v60 = vmul.f32 %v1636_v59, %v3160_v23  ;;  %1724 = vrot.lane.b32.xlu0 %v1631_v56, %s2720_s15  ;;  %1726 = vrot.lane.b32.xlu1 %v1632_v39, %s2720_s15 }
 0x380   : > { %v1624_v37 = vpop.permute.xlu1 %1623 }
 0x381   : > { %v1633_v63 = vmul.f32 %v1624_v37, %v3176_v53 }
 0x382   : > { %v1648_v0 = vpop.permute.xlu0 %1647 }
 0x383   : > { %1728 = vrot.lane.b32.xlu0 %v1633_v63, %s2720_s15  ;;  %1746 = vrot.lane.b32.xlu1 %v1666_v60, %s2721_s23  ;;  %v1669_v4 = vmul.f32 %v1648_v0, %v3162_v57  ;;  %v1550_v57 = vmul.f32 %v3200_v13, %v3171_v51  ;;  %v1553_v13 = vmul.f32 %v3202_v25, %v3176_v53 }
 0x384   : > { %v1552_v63 = vmul.f32 %v3204_v14, %v3178_v54 }
 0x385   : > { %v1640_v62 = vpop.permute.xlu1 %1639 }
 0x386   : > { %v1667_v1 = vmul.f32 %v1640_v62, %v3165_v49  ;;  %v1656_v61 = vpop.permute.xlu0 %1655 }
 0x387   : > { %v1671_v27 = vmul.f32 %v1656_v61, %v3168_v50 }
 0x388   : > { %1748 = vrot.lane.b32.xlu0 %v1667_v1, %s2721_s23 }
 0x389   : > { %v1644_v3 = vpop.permute.xlu1 %1643 }
 0x38a   : > { %v1668_v5 = vmul.f32 %v1644_v3, %v3158_v22  ;;  %v1664_v38 = vpop.permute.xlu0 %1663  ;;  %v1551_v22 = vmul.f32 %v3198_v12, %v3168_v50 }
 0x38b   : > { %v1673_v55 = vmul.f32 %v1664_v38, %v3176_v53 }
 0x38c   : > { %1750 = vrot.lane.b32.xlu1 %v1668_v5, %s2721_s23  ;;  %1752 = vrot.lane.b32.xlu0 %v1669_v4, %s2721_s23 }
 0x38d   : > { %v1652_v6 = vpop.permute.xlu1 %1651 }
 0x38e   : > { %v1670_v7 = vmul.f32 %v1652_v6, %v3171_v51 }
 0x390   : > { %1754 = vrot.lane.b32.xlu1 %v1670_v7, %s2721_s23  ;;  %1756 = vrot.lane.b32.xlu0 %v1671_v27, %s2721_s23 }
 0x391   : > { %v1660_v8 = vpop.permute.xlu1 %1659 }
 0x392   : > { %v1672_v9 = vmul.f32 %v1660_v8, %v3178_v54 }
 0x394   : > { %1758 = vrot.lane.b32.xlu1 %v1672_v9, %s2721_s23  ;;  %1760 = vrot.lane.b32.xlu0 %v1673_v55, %s2721_s23 }
 0x3d4   : > { %v1685_v15 = vpop.permute.xlu0 %1684 }
 0x3d5   : > { %v1683_v16 = vpop.permute.xlu1 %1682  ;;  %v1772_v43 = vsel %vm1770_vm13, %v1547_v24, %v1685_v15 }
 0x3d6   : > { %v1771_v18 = vsel %vm1770_vm13, %v1546_v35, %v1683_v16 }
 0x3d9   : > { %v1687_v52 = vpop.permute.xlu1 %1686  ;;  %v1689_v17 = vpop.permute.xlu0 %1688 }
 0x3da   : > { %v1773_v49 = vsel %vm1770_vm13, %v1548_v44, %v1687_v52  ;;  %v1774_v11 = vsel %vm1770_vm13, %v1549_v45, %v1689_v17 }
 0x3dd   : > { %v1691_v19 = vpop.permute.xlu1 %1690  ;;  %v1693_v20 = vpop.permute.xlu0 %1692 }
 0x3de   : > { %v1775_v59 = vsel %vm1770_vm13, %v1550_v57, %v1691_v19  ;;  %v1776_v60 = vsel %vm1770_vm13, %v1551_v22, %v1693_v20 }
 0x3e1   : > { %v1695_v26 = vpop.permute.xlu1 %1694  ;;  %v1697_v58 = vpop.permute.xlu0 %1696 }
 0x3e2   : > { %v1777_v1 = vsel %vm1770_vm13, %v1552_v63, %v1695_v26  ;;  %v1778_v61 = vsel %vm1770_vm13, %v1553_v13, %v1697_v58 }
 0x3e5   : > { %v1715_v28 = vpop.permute.xlu1 %1714 }
 0x3e6   : > { %v1717_v29 = vpop.permute.xlu0 %1716  ;;  %v1780_v33 = vsel %vm1779_vm14, %v1771_v18, %v1715_v28 }
 0x3e7   : > { %v1781_v23 = vsel %vm1779_vm14, %v1772_v43, %v1717_v29 }
 0x3e9   : > { %v1719_v30 = vpop.permute.xlu1 %1718 }
 0x3ea   : > { %v1782_v47 = vsel %vm1779_vm14, %v1773_v49, %v1719_v30 }
 0x3ed   : > { %v1723_v31 = vpop.permute.xlu1 %1722  ;;  %v1721_v32 = vpop.permute.xlu0 %1720 }
 0x3ee   : > { %v1783_v48 = vsel %vm1779_vm14, %v1774_v11, %v1721_v32  ;;  %v1784_v37 = vsel %vm1779_vm14, %v1775_v59, %v1723_v31 }
 0x3f1   : > { %v1727_v34 = vpop.permute.xlu1 %1726  ;;  %v1725_v2 = vpop.permute.xlu0 %1724 }
 0x3f2   : > { %v1785_v50 = vsel %vm1779_vm14, %v1776_v60, %v1725_v2  ;;  %v1786_v3 = vsel %vm1779_vm14, %v1777_v1, %v1727_v34 }
 0x3f5   : > { %v1747_v36 = vpop.permute.xlu1 %1746  ;;  %v1729_v40 = vpop.permute.xlu0 %1728 }
 0x3f6   : > { %v1789_v41 = vsel %vm1788_vm15, %v1780_v33, %v1747_v36  ;;  %v1787_v4 = vsel %vm1779_vm14, %v1778_v61, %v1729_v40 }
 0x3f7   : > { %1798 = vst.msk [vmem:[%s2836_s17] sm:$0xff] %vm1797_vm0, %v1789_v41 }
 0x3fa   : > { %v1749_v42 = vpop.permute.xlu0 %1748 }
 0x3fb   : > { %v1790_v46 = vsel %vm1788_vm15, %v1781_v23, %v1749_v42 }
 0x3fc   : > { %1799 = vst.msk [vmem:[%s2836_s17 + $0x8] sm:$0xff] %vm1797_vm0, %v1790_v46 }
 0x3fe   : > { %v1751_v39 = vpop.permute.xlu1 %1750  ;;  %v1753_v56 = vpop.permute.xlu0 %1752 }
 0x3ff   : > { %v1791_v10 = vsel %vm1788_vm15, %v1782_v47, %v1751_v39  ;;  %v1792_v21 = vsel %vm1788_vm15, %v1783_v48, %v1753_v56 }
 0x400   : > { %1800 = vst.msk [vmem:[%s2836_s17 + $0x10] sm:$0xff] %vm1797_vm0, %v1791_v10  ;;  %1801 = vst.msk [vmem:[%s2836_s17 + $0x18] sm:$0xff] %vm1797_vm0, %v1792_v21 }
 0x402   : > { %v1755_v12 = vpop.permute.xlu1 %1754  ;;  %v1757_v51 = vpop.permute.xlu0 %1756 }
 0x403   : > { %v1793_v0 = vsel %vm1788_vm15, %v1784_v37, %v1755_v12  ;;  %v1794_v62 = vsel %vm1788_vm15, %v1785_v50, %v1757_v51 }
 0x404   : > { %1802 = vst.msk [vmem:[%s2836_s17 + $0x20] sm:$0xff] %vm1797_vm0, %v1793_v0  ;;  %1803 = vst.msk [vmem:[%s2836_s17 + $0x28] sm:$0xff] %vm1797_vm0, %v1794_v62 }
 0x406   : > { %v1759_v53 = vpop.permute.xlu1 %1758  ;;  %v1761_v25 = vpop.permute.xlu0 %1760 }
 0x407   : > { %v1795_v54 = vsel %vm1788_vm15, %v1786_v3, %v1759_v53  ;;  %v1796_v14 = vsel %vm1788_vm15, %v1787_v4, %v1761_v25 }
 0x408   : > { %1804 = vst.msk [vmem:[%s2836_s17 + $0x30] sm:$0xff] %vm1797_vm0, %v1795_v54  ;;  %1805 = vst.msk [vmem:[%s2836_s17 + $0x38] sm:$0xff] %vm1797_vm0, %v1796_v14 }
 0x409 PF: > { %s21_s28 = sadd.s32 1, %s2701_s28   ;;  %s3313_s23 = smov %s2681_s24 }
 0x40a   : > { %p18_p6 = scmp.ge.s32.totalorder %s21_s28, 11   ;;  %s3314_s24 = smov %s2806_s10 }
 0x40b   : > { %s3315_s25 = smov %s2693_s26  ;;  %s3316_s0 = smov %s2697_s27 }
 0x40c   : > { %s3317_s26 = smov %s3320_s29  ;;  %s3318_s27 = smov %s3324_s30 }
 0x40d   :  { %20 = sbr.rel (!%p18_p6) target bundleno = 19 (0x13), region = 128 }

</bundles_post_ra>
